<compile_context>
chip_gen: v5e
topology: v5e:2x2
jax: 0.10.0
libtpu: 0.0.40
codegen_flags: <defaults>
</compile_context>

<pallas_src>
import numpy as np
import jax
import jax.numpy as jnp
from jax.experimental import pallas as pl
from jax.experimental.pallas import tpu as pltpu

# Fixed architecture constants (LeNet-style net from the PyTorch module).
H = W = 32            # input spatial size (required by fc1 = 16*5*5)
CIN = 3
KS = 5                # conv kernel size
C1 = 6                # conv1 output channels
OH1 = H - KS + 1      # 28
P1 = OH1 // 2         # 14  (after 2x2 max-pool)
C2 = 16               # conv2 output channels
OH2 = P1 - KS + 1     # 10
P2 = OH2 // 2         # 5
F1, F2, NCLS = 120, 84, 10


# --------------------------------------------------------------------------
# Fused forward-pass kernel (one grid step == one batch element)
# --------------------------------------------------------------------------
def _net_kernel(x_ref, m1e_ref, m1o_ref, b1_ref, sh1e_ref, sh1o_ref,
                m2e_ref, m2o_ref, b2_ref, sh2e_ref, sh2o_ref,
                wfc1_ref, bfc1_ref, wfc2_ref, bfc2_ref, wfc3_ref, bfc3_ref,
                o_ref, p1_s, p2_s):
    f32 = jnp.float32

    # ---- conv1 + bias + relu, width-pool fused via even/odd output columns --
    acc_e = jnp.zeros((OH1, C1 * P1), f32)
    acc_o = jnp.zeros((OH1, C1 * P1), f32)
    for ki in range(KS):
        a = x_ref[0, ki:ki + OH1, :]                               # (28, 96)
        acc_e += jnp.dot(a, m1e_ref[ki], preferred_element_type=f32)
        acc_o += jnp.dot(a, m1o_ref[ki], preferred_element_type=f32)
    b1 = b1_ref[...]
    yw = jnp.maximum(jnp.maximum(acc_e + b1, 0.0),
                     jnp.maximum(acc_o + b1, 0.0))                 # (28, 84)
    # height-pool via 0/1 row-selection matmuls (no strided access needed)
    p1 = jnp.maximum(
        jnp.dot(sh1e_ref[...], yw, preferred_element_type=f32),
        jnp.dot(sh1o_ref[...], yw, preferred_element_type=f32))    # (14, 84)
    p1_s[...] = p1

    # ---- conv2 + bias + relu + fused 2x2 pool (same scheme) -----------------
    acc2_e = jnp.zeros((OH2, C2 * P2), f32)
    acc2_o = jnp.zeros((OH2, C2 * P2), f32)
    for ki in range(KS):
        a2 = p1_s[ki:ki + OH2, :]                                  # (10, 84)
        acc2_e += jnp.dot(a2, m2e_ref[ki], preferred_element_type=f32)
        acc2_o += jnp.dot(a2, m2o_ref[ki], preferred_element_type=f32)
    b2 = b2_ref[...]
    y2w = jnp.maximum(jnp.maximum(acc2_e + b2, 0.0),
                      jnp.maximum(acc2_o + b2, 0.0))               # (10, 80)
    p2 = jnp.maximum(
        jnp.dot(sh2e_ref[...], y2w, preferred_element_type=f32),
        jnp.dot(sh2o_ref[...], y2w, preferred_element_type=f32))   # (5, 80)
    p2_s[...] = p2

    # ---- fc1 -> relu -> fc2 -> relu -> fc3 (flatten folded into wfc1) -------
    h1 = jnp.zeros((1, F1), f32)
    for hh in range(P2):
        h1 += jnp.dot(p2_s[hh:hh + 1, :], wfc1_ref[hh],
                      preferred_element_type=f32)
    h1 = jnp.maximum(h1 + bfc1_ref[...], 0.0)
    h2 = jnp.maximum(
        jnp.dot(h1, wfc2_ref[...], preferred_element_type=f32) + bfc2_ref[...],
        0.0)
    out = jnp.dot(h2, wfc3_ref[...], preferred_element_type=f32) + bfc3_ref[...]
    o_ref[0] = out                                                 # (1, 10)


# --------------------------------------------------------------------------
# One-time parameter preparation (pure layout work, exact — no arithmetic)
# --------------------------------------------------------------------------
def _conv_toeplitz(w_oihw, w_in, parity, channel_major_rows):
    """Block-Toeplitz matrix M so that x_rows @ M computes one conv tap-row.

    Output columns are (cout, q) with w_out = 2*q + parity, so the even/odd
    pair of matrices delivers the two width positions of each 2x2 pool window.
    """
    w = np.asarray(w_oihw, dtype=np.float32)
    cout, cin, kh, kw = w.shape
    ow = w_in - kw + 1
    owh = ow // 2
    m = np.zeros((kh, w_in, cin, cout, owh), np.float32)
    for kj in range(kw):
        for q in range(owh):
            w_pos = 2 * q + parity + kj
            # m[ki, w_pos, c, o, q] = w[o, c, ki, kj]
            m[:, w_pos, :, :, q] = np.transpose(w[:, :, :, kj], (2, 1, 0))
    if channel_major_rows:                    # rows indexed c*w_in + w
        m = np.transpose(m, (0, 2, 1, 3, 4))
    return jnp.asarray(m.reshape(kh, w_in * cin, cout * owh))


def _pool_row_selectors(rows):
    half = rows // 2
    e = np.zeros((half, rows), np.float32)
    o = np.zeros((half, rows), np.float32)
    e[np.arange(half), 2 * np.arange(half)] = 1.0
    o[np.arange(half), 2 * np.arange(half) + 1] = 1.0
    return jnp.asarray(e), jnp.asarray(o)


def prepare_params(params):
    """Fold conv im2col, pool layout and the NCHW-flatten order into weights."""
    sh1e, sh1o = _pool_row_selectors(OH1)
    sh2e, sh2o = _pool_row_selectors(OH2)
    # fc1 input index (torch) = c*25 + h*5 + w  ->  our layout (h, c*5 + w)
    wfc1 = jnp.transpose(
        params["fc1_w"].reshape(F1, C2, P2, P2), (2, 1, 3, 0)
    ).reshape(P2, C2 * P2, F1)                                   # (5, 80, 120)
    return dict(
        m1e=_conv_toeplitz(params["conv1_w"], W, 0, False),      # (5, 96, 84)
        m1o=_conv_toeplitz(params["conv1_w"], W, 1, False),
        b1=jnp.repeat(params["conv1_b"], P1)[None, :],           # (1, 84)
        sh1e=sh1e, sh1o=sh1o,                                    # (14, 28)
        m2e=_conv_toeplitz(params["conv2_w"], P1, 0, True),      # (5, 84, 80)
        m2o=_conv_toeplitz(params["conv2_w"], P1, 1, True),
        b2=jnp.repeat(params["conv2_b"], P2)[None, :],           # (1, 80)
        sh2e=sh2e, sh2o=sh2o,                                    # (5, 10)
        wfc1=wfc1,
        bfc1=params["fc1_b"][None, :],
        wfc2=params["fc2_w"].T, bfc2=params["fc2_b"][None, :],
        wfc3=params["fc3_w"].T, bfc3=params["fc3_b"][None, :],
    )


_WEIGHT_ORDER = ("m1e", "m1o", "b1", "sh1e", "sh1o",
                 "m2e", "m2o", "b2", "sh2e", "sh2o",
                 "wfc1", "bfc1", "wfc2", "bfc2", "wfc3", "bfc3")


def net_forward(prepped, x_nchw):
    n = x_nchw.shape[0]
    # NCHW -> NHWC -> (N, H, W*C): lane index = w*CIN + c
    x = jnp.transpose(x_nchw, (0, 2, 3, 1)).reshape(n, H, W * CIN)
    weights = [prepped[k] for k in _WEIGHT_ORDER]

    def _const_spec(arr):
        zeros = (0,) * arr.ndim
        return pl.BlockSpec(arr.shape, lambda i, z=zeros: z)

    in_specs = [pl.BlockSpec((1, H, W * CIN), lambda i: (i, 0, 0))]
    in_specs += [_const_spec(a) for a in weights]

    out = pl.pallas_call(
        _net_kernel,
        out_shape=jax.ShapeDtypeStruct((n, 1, NCLS), jnp.float32),
        grid=(n,),
        in_specs=in_specs,
        out_specs=pl.BlockSpec((1, 1, NCLS), lambda i: (i, 0, 0)),
        scratch_shapes=[pltpu.VMEM((P1, C1 * P1), jnp.float32),
                        pltpu.VMEM((P2, C2 * P2), jnp.float32)],
        compiler_params=pltpu.CompilerParams(
            dimension_semantics=("parallel",)),
    )(x, *weights)
    return out.reshape(n, NCLS)


# --------------------------------------------------------------------------
# Deterministic parameter init (PyTorch-default-like uniform(+-1/sqrt(fan_in)))
# --------------------------------------------------------------------------
def init_params(key):
    def uni(k, shape, fan_in):
        bound = 1.0 / (fan_in ** 0.5)
        return jax.random.uniform(k, shape, jnp.float32, -bound, bound)

    ks = jax.random.split(key, 10)
    return {
        "conv1_w": uni(ks[0], (C1, CIN, KS, KS), CIN * KS * KS),
        "conv1_b": uni(ks[1], (C1,), CIN * KS * KS),
        "conv2_w": uni(ks[2], (C2, C1, KS, KS), C1 * KS * KS),
        "conv2_b": uni(ks[3], (C2,), C1 * KS * KS),
        "fc1_w": uni(ks[4], (F1, C2 * P2 * P2), C2 * P2 * P2),
        "fc1_b": uni(ks[5], (F1,), C2 * P2 * P2),
        "fc2_w": uni(ks[6], (F2, F1), F1),
        "fc2_b": uni(ks[7], (F2,), F1),
        "fc3_w": uni(ks[8], (NCLS, F2), F2),
        "fc3_b": uni(ks[9], (NCLS,), F2),
    }


# --------------------------------------------------------------------------
# Pure-JAX reference (XLA conv / matmul) for a correctness check
# --------------------------------------------------------------------------
def ref_forward(params, x_nchw):
    dn = ("NCHW", "OIHW", "NCHW")
    y = jax.lax.conv_general_dilated(
        x_nchw, params["conv1_w"], (1, 1), "VALID", dimension_numbers=dn)
    y = jax.nn.relu(y + params["conv1_b"][None, :, None, None])
    y = jax.lax.reduce_window(y, -jnp.inf, jax.lax.max,
                              (1, 1, 2, 2), (1, 1, 2, 2), "VALID")
    y = jax.lax.conv_general_dilated(
        y, params["conv2_w"], (1, 1), "VALID", dimension_numbers=dn)
    y = jax.nn.relu(y + params["conv2_b"][None, :, None, None])
    y = jax.lax.reduce_window(y, -jnp.inf, jax.lax.max,
                              (1, 1, 2, 2), (1, 1, 2, 2), "VALID")
    y = y.reshape(y.shape[0], -1)
    y = jax.nn.relu(y @ params["fc1_w"].T + params["fc1_b"])
    y = jax.nn.relu(y @ params["fc2_w"].T + params["fc2_b"])
    return y @ params["fc3_w"].T + params["fc3_b"]


if __name__ == "__main__":
    key = jax.random.PRNGKey(0)
    pkey, xkey = jax.random.split(key)
    params = init_params(pkey)
    # Spatial size 32 is fixed by fc1 = 16*5*5; batch kept small.
    x = jax.random.normal(xkey, (2, CIN, H, W), jnp.float32)

    prepped = prepare_params(params)          # one-time weight preparation
    out = jax.block_until_ready(jax.jit(net_forward)(prepped, x))
    assert out.shape == (2, NCLS), out.shape

    ref = jax.block_until_ready(jax.jit(ref_forward)(params, x))
    max_err = float(jnp.max(jnp.abs(out - ref)))
    assert max_err < 1e-2, f"mismatch vs reference: {max_err}"

    print("KERNEL_OK")
</pallas_src>

<mosaic_0001>
module attributes {stable_mosaic.version = 11 : i64} {
  func.func @_net_kernel(%arg0: i32, %arg1: memref<1x32x96xf32, #tpu.memory_space<vmem>>, %arg2: memref<5x96x84xf32, #tpu.memory_space<vmem>>, %arg3: memref<5x96x84xf32, #tpu.memory_space<vmem>>, %arg4: memref<1x84xf32, #tpu.memory_space<vmem>>, %arg5: memref<14x28xf32, #tpu.memory_space<vmem>>, %arg6: memref<14x28xf32, #tpu.memory_space<vmem>>, %arg7: memref<5x84x80xf32, #tpu.memory_space<vmem>>, %arg8: memref<5x84x80xf32, #tpu.memory_space<vmem>>, %arg9: memref<1x80xf32, #tpu.memory_space<vmem>>, %arg10: memref<5x10xf32, #tpu.memory_space<vmem>>, %arg11: memref<5x10xf32, #tpu.memory_space<vmem>>, %arg12: memref<5x80x120xf32, #tpu.memory_space<vmem>>, %arg13: memref<1x120xf32, #tpu.memory_space<vmem>>, %arg14: memref<120x84xf32, #tpu.memory_space<vmem>>, %arg15: memref<1x84xf32, #tpu.memory_space<vmem>>, %arg16: memref<84x10xf32, #tpu.memory_space<vmem>>, %arg17: memref<1x10xf32, #tpu.memory_space<vmem>>, %arg18: memref<1x1x10xf32, #tpu.memory_space<vmem>>, %arg19: memref<14x84xf32, #tpu.memory_space<vmem>>, %arg20: memref<5x80xf32, #tpu.memory_space<vmem>>) attributes {dimension_semantics = [#tpu.dimension_semantics<parallel>], iteration_bounds = array<i64: 2>, scalar_prefetch = 0 : i64, scratch_operands = 2 : i64, tpu.core_type = #tpu.core_type<tc>, window_params = [{transform_indices = @transform_0, window_bounds = array<i64: 1, 32, 96>}, {pipeline_mode = #tpu.pipeline_mode<synchronous>, transform_indices = @transform_1, window_bounds = array<i64: 5, 96, 84>}, {pipeline_mode = #tpu.pipeline_mode<synchronous>, transform_indices = @transform_2, window_bounds = array<i64: 5, 96, 84>}, {pipeline_mode = #tpu.pipeline_mode<synchronous>, transform_indices = @transform_3, window_bounds = array<i64: 1, 84>}, {pipeline_mode = #tpu.pipeline_mode<synchronous>, transform_indices = @transform_4, window_bounds = array<i64: 14, 28>}, {pipeline_mode = #tpu.pipeline_mode<synchronous>, transform_indices = @transform_5, window_bounds = array<i64: 14, 28>}, {pipeline_mode = #tpu.pipeline_mode<synchronous>, transform_indices = @transform_6, window_bounds = array<i64: 5, 84, 80>}, {pipeline_mode = #tpu.pipeline_mode<synchronous>, transform_indices = @transform_7, window_bounds = array<i64: 5, 84, 80>}, {pipeline_mode = #tpu.pipeline_mode<synchronous>, transform_indices = @transform_8, window_bounds = array<i64: 1, 80>}, {pipeline_mode = #tpu.pipeline_mode<synchronous>, transform_indices = @transform_9, window_bounds = array<i64: 5, 10>}, {pipeline_mode = #tpu.pipeline_mode<synchronous>, transform_indices = @transform_10, window_bounds = array<i64: 5, 10>}, {pipeline_mode = #tpu.pipeline_mode<synchronous>, transform_indices = @transform_11, window_bounds = array<i64: 5, 80, 120>}, {pipeline_mode = #tpu.pipeline_mode<synchronous>, transform_indices = @transform_12, window_bounds = array<i64: 1, 120>}, {pipeline_mode = #tpu.pipeline_mode<synchronous>, transform_indices = @transform_13, window_bounds = array<i64: 120, 84>}, {pipeline_mode = #tpu.pipeline_mode<synchronous>, transform_indices = @transform_14, window_bounds = array<i64: 1, 84>}, {pipeline_mode = #tpu.pipeline_mode<synchronous>, transform_indices = @transform_15, window_bounds = array<i64: 84, 10>}, {pipeline_mode = #tpu.pipeline_mode<synchronous>, transform_indices = @transform_16, window_bounds = array<i64: 1, 10>}, {transform_indices = @transform_17, window_bounds = array<i64: 1, 1, 10>}]} {
    %cst = arith.constant 0.000000e+00 : f32
    %0 = vector.broadcast %cst : f32 to vector<28x84xf32>
    %cst_0 = arith.constant 0.000000e+00 : f32
    %1 = vector.broadcast %cst_0 : f32 to vector<28x84xf32>
    %c0 = arith.constant 0 : index
    %c0_1 = arith.constant 0 : index
    %c0_2 = arith.constant 0 : index
    %2 = vector.load %arg1[%c0, %c0_1, %c0_2] : memref<1x32x96xf32, #tpu.memory_space<vmem>>, vector<1x28x96xf32>
    %3 = vector.shape_cast %2 : vector<1x28x96xf32> to vector<28x96xf32>
    %c0_3 = arith.constant 0 : index
    %c0_4 = arith.constant 0 : index
    %c0_5 = arith.constant 0 : index
    %4 = vector.load %arg2[%c0_3, %c0_4, %c0_5] : memref<5x96x84xf32, #tpu.memory_space<vmem>>, vector<1x96x84xf32>
    %5 = vector.shape_cast %4 : vector<1x96x84xf32> to vector<96x84xf32>
    %cst_6 = arith.constant dense<0.000000e+00> : vector<28x84xf32>
    %6 = tpu.matmul %3, %5, %cst_6 {dimension_numbers = #tpu.dot_dimension_numbers<[1], [0], [0], [1], [0, 0, 1, 1], [], []>} : vector<28x96xf32>, vector<96x84xf32>, vector<28x84xf32> -> vector<28x84xf32>
    %7 = arith.addf %0, %6 : vector<28x84xf32>
    %c0_7 = arith.constant 0 : index
    %c0_8 = arith.constant 0 : index
    %c0_9 = arith.constant 0 : index
    %8 = vector.load %arg3[%c0_7, %c0_8, %c0_9] : memref<5x96x84xf32, #tpu.memory_space<vmem>>, vector<1x96x84xf32>
    %9 = vector.shape_cast %8 : vector<1x96x84xf32> to vector<96x84xf32>
    %cst_10 = arith.constant dense<0.000000e+00> : vector<28x84xf32>
    %10 = tpu.matmul %3, %9, %cst_10 {dimension_numbers = #tpu.dot_dimension_numbers<[1], [0], [0], [1], [0, 0, 1, 1], [], []>} : vector<28x96xf32>, vector<96x84xf32>, vector<28x84xf32> -> vector<28x84xf32>
    %11 = arith.addf %1, %10 : vector<28x84xf32>
    %c0_11 = arith.constant 0 : index
    %c1 = arith.constant 1 : index
    %c0_12 = arith.constant 0 : index
    %12 = vector.load %arg1[%c0_11, %c1, %c0_12] : memref<1x32x96xf32, #tpu.memory_space<vmem>>, vector<1x28x96xf32>
    %13 = vector.shape_cast %12 : vector<1x28x96xf32> to vector<28x96xf32>
    %c1_13 = arith.constant 1 : index
    %c0_14 = arith.constant 0 : index
    %c0_15 = arith.constant 0 : index
    %14 = vector.load %arg2[%c1_13, %c0_14, %c0_15] : memref<5x96x84xf32, #tpu.memory_space<vmem>>, vector<1x96x84xf32>
    %15 = vector.shape_cast %14 : vector<1x96x84xf32> to vector<96x84xf32>
    %cst_16 = arith.constant dense<0.000000e+00> : vector<28x84xf32>
    %16 = tpu.matmul %13, %15, %cst_16 {dimension_numbers = #tpu.dot_dimension_numbers<[1], [0], [0], [1], [0, 0, 1, 1], [], []>} : vector<28x96xf32>, vector<96x84xf32>, vector<28x84xf32> -> vector<28x84xf32>
    %17 = arith.addf %7, %16 : vector<28x84xf32>
    %c1_17 = arith.constant 1 : index
    %c0_18 = arith.constant 0 : index
    %c0_19 = arith.constant 0 : index
    %18 = vector.load %arg3[%c1_17, %c0_18, %c0_19] : memref<5x96x84xf32, #tpu.memory_space<vmem>>, vector<1x96x84xf32>
    %19 = vector.shape_cast %18 : vector<1x96x84xf32> to vector<96x84xf32>
    %cst_20 = arith.constant dense<0.000000e+00> : vector<28x84xf32>
    %20 = tpu.matmul %13, %19, %cst_20 {dimension_numbers = #tpu.dot_dimension_numbers<[1], [0], [0], [1], [0, 0, 1, 1], [], []>} : vector<28x96xf32>, vector<96x84xf32>, vector<28x84xf32> -> vector<28x84xf32>
    %21 = arith.addf %11, %20 : vector<28x84xf32>
    %c0_21 = arith.constant 0 : index
    %c2 = arith.constant 2 : index
    %c0_22 = arith.constant 0 : index
    %22 = vector.load %arg1[%c0_21, %c2, %c0_22] : memref<1x32x96xf32, #tpu.memory_space<vmem>>, vector<1x28x96xf32>
    %23 = vector.shape_cast %22 : vector<1x28x96xf32> to vector<28x96xf32>
    %c2_23 = arith.constant 2 : index
    %c0_24 = arith.constant 0 : index
    %c0_25 = arith.constant 0 : index
    %24 = vector.load %arg2[%c2_23, %c0_24, %c0_25] : memref<5x96x84xf32, #tpu.memory_space<vmem>>, vector<1x96x84xf32>
    %25 = vector.shape_cast %24 : vector<1x96x84xf32> to vector<96x84xf32>
    %cst_26 = arith.constant dense<0.000000e+00> : vector<28x84xf32>
    %26 = tpu.matmul %23, %25, %cst_26 {dimension_numbers = #tpu.dot_dimension_numbers<[1], [0], [0], [1], [0, 0, 1, 1], [], []>} : vector<28x96xf32>, vector<96x84xf32>, vector<28x84xf32> -> vector<28x84xf32>
    %27 = arith.addf %17, %26 : vector<28x84xf32>
    %c2_27 = arith.constant 2 : index
    %c0_28 = arith.constant 0 : index
    %c0_29 = arith.constant 0 : index
    %28 = vector.load %arg3[%c2_27, %c0_28, %c0_29] : memref<5x96x84xf32, #tpu.memory_space<vmem>>, vector<1x96x84xf32>
    %29 = vector.shape_cast %28 : vector<1x96x84xf32> to vector<96x84xf32>
    %cst_30 = arith.constant dense<0.000000e+00> : vector<28x84xf32>
    %30 = tpu.matmul %23, %29, %cst_30 {dimension_numbers = #tpu.dot_dimension_numbers<[1], [0], [0], [1], [0, 0, 1, 1], [], []>} : vector<28x96xf32>, vector<96x84xf32>, vector<28x84xf32> -> vector<28x84xf32>
    %31 = arith.addf %21, %30 : vector<28x84xf32>
    %c0_31 = arith.constant 0 : index
    %c3 = arith.constant 3 : index
    %c0_32 = arith.constant 0 : index
    %32 = vector.load %arg1[%c0_31, %c3, %c0_32] : memref<1x32x96xf32, #tpu.memory_space<vmem>>, vector<1x28x96xf32>
    %33 = vector.shape_cast %32 : vector<1x28x96xf32> to vector<28x96xf32>
    %c3_33 = arith.constant 3 : index
    %c0_34 = arith.constant 0 : index
    %c0_35 = arith.constant 0 : index
    %34 = vector.load %arg2[%c3_33, %c0_34, %c0_35] : memref<5x96x84xf32, #tpu.memory_space<vmem>>, vector<1x96x84xf32>
    %35 = vector.shape_cast %34 : vector<1x96x84xf32> to vector<96x84xf32>
    %cst_36 = arith.constant dense<0.000000e+00> : vector<28x84xf32>
    %36 = tpu.matmul %33, %35, %cst_36 {dimension_numbers = #tpu.dot_dimension_numbers<[1], [0], [0], [1], [0, 0, 1, 1], [], []>} : vector<28x96xf32>, vector<96x84xf32>, vector<28x84xf32> -> vector<28x84xf32>
    %37 = arith.addf %27, %36 : vector<28x84xf32>
    %c3_37 = arith.constant 3 : index
    %c0_38 = arith.constant 0 : index
    %c0_39 = arith.constant 0 : index
    %38 = vector.load %arg3[%c3_37, %c0_38, %c0_39] : memref<5x96x84xf32, #tpu.memory_space<vmem>>, vector<1x96x84xf32>
    %39 = vector.shape_cast %38 : vector<1x96x84xf32> to vector<96x84xf32>
    %cst_40 = arith.constant dense<0.000000e+00> : vector<28x84xf32>
    %40 = tpu.matmul %33, %39, %cst_40 {dimension_numbers = #tpu.dot_dimension_numbers<[1], [0], [0], [1], [0, 0, 1, 1], [], []>} : vector<28x96xf32>, vector<96x84xf32>, vector<28x84xf32> -> vector<28x84xf32>
    %41 = arith.addf %31, %40 : vector<28x84xf32>
    %c0_41 = arith.constant 0 : index
    %c4 = arith.constant 4 : index
    %c0_42 = arith.constant 0 : index
    %42 = vector.load %arg1[%c0_41, %c4, %c0_42] : memref<1x32x96xf32, #tpu.memory_space<vmem>>, vector<1x28x96xf32>
    %43 = vector.shape_cast %42 : vector<1x28x96xf32> to vector<28x96xf32>
    %c4_43 = arith.constant 4 : index
    %c0_44 = arith.constant 0 : index
    %c0_45 = arith.constant 0 : index
    %44 = vector.load %arg2[%c4_43, %c0_44, %c0_45] : memref<5x96x84xf32, #tpu.memory_space<vmem>>, vector<1x96x84xf32>
    %45 = vector.shape_cast %44 : vector<1x96x84xf32> to vector<96x84xf32>
    %cst_46 = arith.constant dense<0.000000e+00> : vector<28x84xf32>
    %46 = tpu.matmul %43, %45, %cst_46 {dimension_numbers = #tpu.dot_dimension_numbers<[1], [0], [0], [1], [0, 0, 1, 1], [], []>} : vector<28x96xf32>, vector<96x84xf32>, vector<28x84xf32> -> vector<28x84xf32>
    %47 = arith.addf %37, %46 : vector<28x84xf32>
    %c4_47 = arith.constant 4 : index
    %c0_48 = arith.constant 0 : index
    %c0_49 = arith.constant 0 : index
    %48 = vector.load %arg3[%c4_47, %c0_48, %c0_49] : memref<5x96x84xf32, #tpu.memory_space<vmem>>, vector<1x96x84xf32>
    %49 = vector.shape_cast %48 : vector<1x96x84xf32> to vector<96x84xf32>
    %cst_50 = arith.constant dense<0.000000e+00> : vector<28x84xf32>
    %50 = tpu.matmul %43, %49, %cst_50 {dimension_numbers = #tpu.dot_dimension_numbers<[1], [0], [0], [1], [0, 0, 1, 1], [], []>} : vector<28x96xf32>, vector<96x84xf32>, vector<28x84xf32> -> vector<28x84xf32>
    %51 = arith.addf %41, %50 : vector<28x84xf32>
    %c0_51 = arith.constant 0 : index
    %c0_52 = arith.constant 0 : index
    %52 = vector.load %arg4[%c0_51, %c0_52] : memref<1x84xf32, #tpu.memory_space<vmem>>, vector<1x84xf32>
    %53 = vector.broadcast %52 : vector<1x84xf32> to vector<28x84xf32>
    %54 = arith.addf %47, %53 : vector<28x84xf32>
    %cst_53 = arith.constant 0.000000e+00 : f32
    %55 = vector.broadcast %cst_53 : f32 to vector<28x84xf32>
    %56 = arith.maximumf %54, %55 : vector<28x84xf32>
    %57 = vector.broadcast %52 : vector<1x84xf32> to vector<28x84xf32>
    %58 = arith.addf %51, %57 : vector<28x84xf32>
    %cst_54 = arith.constant 0.000000e+00 : f32
    %59 = vector.broadcast %cst_54 : f32 to vector<28x84xf32>
    %60 = arith.maximumf %58, %59 : vector<28x84xf32>
    %61 = arith.maximumf %56, %60 : vector<28x84xf32>
    %c0_55 = arith.constant 0 : index
    %c0_56 = arith.constant 0 : index
    %62 = vector.load %arg5[%c0_55, %c0_56] : memref<14x28xf32, #tpu.memory_space<vmem>>, vector<14x28xf32>
    %cst_57 = arith.constant dense<0.000000e+00> : vector<14x84xf32>
    %63 = tpu.matmul %62, %61, %cst_57 {dimension_numbers = #tpu.dot_dimension_numbers<[1], [0], [0], [1], [0, 0, 1, 1], [], []>} : vector<14x28xf32>, vector<28x84xf32>, vector<14x84xf32> -> vector<14x84xf32>
    %c0_58 = arith.constant 0 : index
    %c0_59 = arith.constant 0 : index
    %64 = vector.load %arg6[%c0_58, %c0_59] : memref<14x28xf32, #tpu.memory_space<vmem>>, vector<14x28xf32>
    %cst_60 = arith.constant dense<0.000000e+00> : vector<14x84xf32>
    %65 = tpu.matmul %64, %61, %cst_60 {dimension_numbers = #tpu.dot_dimension_numbers<[1], [0], [0], [1], [0, 0, 1, 1], [], []>} : vector<14x28xf32>, vector<28x84xf32>, vector<14x84xf32> -> vector<14x84xf32>
    %66 = arith.maximumf %63, %65 : vector<14x84xf32>
    %c0_61 = arith.constant 0 : index
    %c0_62 = arith.constant 0 : index
    %67 = vector.load %arg19[%c0_61, %c0_62] : memref<14x84xf32, #tpu.memory_space<vmem>>, vector<14x84xf32>
    tpu.vector_store %arg19[%c0_61, %c0_62], %66 {strides = array<i32>} : memref<14x84xf32, #tpu.memory_space<vmem>>, vector<14x84xf32>,
    %cst_63 = arith.constant 0.000000e+00 : f32
    %68 = vector.broadcast %cst_63 : f32 to vector<10x80xf32>
    %cst_64 = arith.constant 0.000000e+00 : f32
    %69 = vector.broadcast %cst_64 : f32 to vector<10x80xf32>
    %c0_65 = arith.constant 0 : index
    %c0_66 = arith.constant 0 : index
    %70 = vector.load %arg19[%c0_65, %c0_66] : memref<14x84xf32, #tpu.memory_space<vmem>>, vector<10x84xf32>
    %c0_67 = arith.constant 0 : index
    %c0_68 = arith.constant 0 : index
    %c0_69 = arith.constant 0 : index
    %71 = vector.load %arg7[%c0_67, %c0_68, %c0_69] : memref<5x84x80xf32, #tpu.memory_space<vmem>>, vector<1x84x80xf32>
    %72 = vector.shape_cast %71 : vector<1x84x80xf32> to vector<84x80xf32>
    %cst_70 = arith.constant dense<0.000000e+00> : vector<10x80xf32>
    %73 = tpu.matmul %70, %72, %cst_70 {dimension_numbers = #tpu.dot_dimension_numbers<[1], [0], [0], [1], [0, 0, 1, 1], [], []>} : vector<10x84xf32>, vector<84x80xf32>, vector<10x80xf32> -> vector<10x80xf32>
    %74 = arith.addf %68, %73 : vector<10x80xf32>
    %c0_71 = arith.constant 0 : index
    %c0_72 = arith.constant 0 : index
    %c0_73 = arith.constant 0 : index
    %75 = vector.load %arg8[%c0_71, %c0_72, %c0_73] : memref<5x84x80xf32, #tpu.memory_space<vmem>>, vector<1x84x80xf32>
    %76 = vector.shape_cast %75 : vector<1x84x80xf32> to vector<84x80xf32>
    %cst_74 = arith.constant dense<0.000000e+00> : vector<10x80xf32>
    %77 = tpu.matmul %70, %76, %cst_74 {dimension_numbers = #tpu.dot_dimension_numbers<[1], [0], [0], [1], [0, 0, 1, 1], [], []>} : vector<10x84xf32>, vector<84x80xf32>, vector<10x80xf32> -> vector<10x80xf32>
    %78 = arith.addf %69, %77 : vector<10x80xf32>
    %c1_75 = arith.constant 1 : index
    %c0_76 = arith.constant 0 : index
    %79 = vector.load %arg19[%c1_75, %c0_76] : memref<14x84xf32, #tpu.memory_space<vmem>>, vector<10x84xf32>
    %c1_77 = arith.constant 1 : index
    %c0_78 = arith.constant 0 : index
    %c0_79 = arith.constant 0 : index
    %80 = vector.load %arg7[%c1_77, %c0_78, %c0_79] : memref<5x84x80xf32, #tpu.memory_space<vmem>>, vector<1x84x80xf32>
    %81 = vector.shape_cast %80 : vector<1x84x80xf32> to vector<84x80xf32>
    %cst_80 = arith.constant dense<0.000000e+00> : vector<10x80xf32>
    %82 = tpu.matmul %79, %81, %cst_80 {dimension_numbers = #tpu.dot_dimension_numbers<[1], [0], [0], [1], [0, 0, 1, 1], [], []>} : vector<10x84xf32>, vector<84x80xf32>, vector<10x80xf32> -> vector<10x80xf32>
    %83 = arith.addf %74, %82 : vector<10x80xf32>
    %c1_81 = arith.constant 1 : index
    %c0_82 = arith.constant 0 : index
    %c0_83 = arith.constant 0 : index
    %84 = vector.load %arg8[%c1_81, %c0_82, %c0_83] : memref<5x84x80xf32, #tpu.memory_space<vmem>>, vector<1x84x80xf32>
    %85 = vector.shape_cast %84 : vector<1x84x80xf32> to vector<84x80xf32>
    %cst_84 = arith.constant dense<0.000000e+00> : vector<10x80xf32>
    %86 = tpu.matmul %79, %85, %cst_84 {dimension_numbers = #tpu.dot_dimension_numbers<[1], [0], [0], [1], [0, 0, 1, 1], [], []>} : vector<10x84xf32>, vector<84x80xf32>, vector<10x80xf32> -> vector<10x80xf32>
    %87 = arith.addf %78, %86 : vector<10x80xf32>
    %c2_85 = arith.constant 2 : index
    %c0_86 = arith.constant 0 : index
    %88 = vector.load %arg19[%c2_85, %c0_86] : memref<14x84xf32, #tpu.memory_space<vmem>>, vector<10x84xf32>
    %c2_87 = arith.constant 2 : index
    %c0_88 = arith.constant 0 : index
    %c0_89 = arith.constant 0 : index
    %89 = vector.load %arg7[%c2_87, %c0_88, %c0_89] : memref<5x84x80xf32, #tpu.memory_space<vmem>>, vector<1x84x80xf32>
    %90 = vector.shape_cast %89 : vector<1x84x80xf32> to vector<84x80xf32>
    %cst_90 = arith.constant dense<0.000000e+00> : vector<10x80xf32>
    %91 = tpu.matmul %88, %90, %cst_90 {dimension_numbers = #tpu.dot_dimension_numbers<[1], [0], [0], [1], [0, 0, 1, 1], [], []>} : vector<10x84xf32>, vector<84x80xf32>, vector<10x80xf32> -> vector<10x80xf32>
    %92 = arith.addf %83, %91 : vector<10x80xf32>
    %c2_91 = arith.constant 2 : index
    %c0_92 = arith.constant 0 : index
    %c0_93 = arith.constant 0 : index
    %93 = vector.load %arg8[%c2_91, %c0_92, %c0_93] : memref<5x84x80xf32, #tpu.memory_space<vmem>>, vector<1x84x80xf32>
    %94 = vector.shape_cast %93 : vector<1x84x80xf32> to vector<84x80xf32>
    %cst_94 = arith.constant dense<0.000000e+00> : vector<10x80xf32>
    %95 = tpu.matmul %88, %94, %cst_94 {dimension_numbers = #tpu.dot_dimension_numbers<[1], [0], [0], [1], [0, 0, 1, 1], [], []>} : vector<10x84xf32>, vector<84x80xf32>, vector<10x80xf32> -> vector<10x80xf32>
    %96 = arith.addf %87, %95 : vector<10x80xf32>
    %c3_95 = arith.constant 3 : index
    %c0_96 = arith.constant 0 : index
    %97 = vector.load %arg19[%c3_95, %c0_96] : memref<14x84xf32, #tpu.memory_space<vmem>>, vector<10x84xf32>
    %c3_97 = arith.constant 3 : index
    %c0_98 = arith.constant 0 : index
    %c0_99 = arith.constant 0 : index
    %98 = vector.load %arg7[%c3_97, %c0_98, %c0_99] : memref<5x84x80xf32, #tpu.memory_space<vmem>>, vector<1x84x80xf32>
    %99 = vector.shape_cast %98 : vector<1x84x80xf32> to vector<84x80xf32>
    %cst_100 = arith.constant dense<0.000000e+00> : vector<10x80xf32>
    %100 = tpu.matmul %97, %99, %cst_100 {dimension_numbers = #tpu.dot_dimension_numbers<[1], [0], [0], [1], [0, 0, 1, 1], [], []>} : vector<10x84xf32>, vector<84x80xf32>, vector<10x80xf32> -> vector<10x80xf32>
    %101 = arith.addf %92, %100 : vector<10x80xf32>
    %c3_101 = arith.constant 3 : index
    %c0_102 = arith.constant 0 : index
    %c0_103 = arith.constant 0 : index
    %102 = vector.load %arg8[%c3_101, %c0_102, %c0_103] : memref<5x84x80xf32, #tpu.memory_space<vmem>>, vector<1x84x80xf32>
    %103 = vector.shape_cast %102 : vector<1x84x80xf32> to vector<84x80xf32>
    %cst_104 = arith.constant dense<0.000000e+00> : vector<10x80xf32>
    %104 = tpu.matmul %97, %103, %cst_104 {dimension_numbers = #tpu.dot_dimension_numbers<[1], [0], [0], [1], [0, 0, 1, 1], [], []>} : vector<10x84xf32>, vector<84x80xf32>, vector<10x80xf32> -> vector<10x80xf32>
    %105 = arith.addf %96, %104 : vector<10x80xf32>
    %c4_105 = arith.constant 4 : index
    %c0_106 = arith.constant 0 : index
    %106 = vector.load %arg19[%c4_105, %c0_106] : memref<14x84xf32, #tpu.memory_space<vmem>>, vector<10x84xf32>
    %c4_107 = arith.constant 4 : index
    %c0_108 = arith.constant 0 : index
    %c0_109 = arith.constant 0 : index
    %107 = vector.load %arg7[%c4_107, %c0_108, %c0_109] : memref<5x84x80xf32, #tpu.memory_space<vmem>>, vector<1x84x80xf32>
    %108 = vector.shape_cast %107 : vector<1x84x80xf32> to vector<84x80xf32>
    %cst_110 = arith.constant dense<0.000000e+00> : vector<10x80xf32>
    %109 = tpu.matmul %106, %108, %cst_110 {dimension_numbers = #tpu.dot_dimension_numbers<[1], [0], [0], [1], [0, 0, 1, 1], [], []>} : vector<10x84xf32>, vector<84x80xf32>, vector<10x80xf32> -> vector<10x80xf32>
    %110 = arith.addf %101, %109 : vector<10x80xf32>
    %c4_111 = arith.constant 4 : index
    %c0_112 = arith.constant 0 : index
    %c0_113 = arith.constant 0 : index
    %111 = vector.load %arg8[%c4_111, %c0_112, %c0_113] : memref<5x84x80xf32, #tpu.memory_space<vmem>>, vector<1x84x80xf32>
    %112 = vector.shape_cast %111 : vector<1x84x80xf32> to vector<84x80xf32>
    %cst_114 = arith.constant dense<0.000000e+00> : vector<10x80xf32>
    %113 = tpu.matmul %106, %112, %cst_114 {dimension_numbers = #tpu.dot_dimension_numbers<[1], [0], [0], [1], [0, 0, 1, 1], [], []>} : vector<10x84xf32>, vector<84x80xf32>, vector<10x80xf32> -> vector<10x80xf32>
    %114 = arith.addf %105, %113 : vector<10x80xf32>
    %c0_115 = arith.constant 0 : index
    %c0_116 = arith.constant 0 : index
    %115 = vector.load %arg9[%c0_115, %c0_116] : memref<1x80xf32, #tpu.memory_space<vmem>>, vector<1x80xf32>
    %116 = vector.broadcast %115 : vector<1x80xf32> to vector<10x80xf32>
    %117 = arith.addf %110, %116 : vector<10x80xf32>
    %cst_117 = arith.constant 0.000000e+00 : f32
    %118 = vector.broadcast %cst_117 : f32 to vector<10x80xf32>
    %119 = arith.maximumf %117, %118 : vector<10x80xf32>
    %120 = vector.broadcast %115 : vector<1x80xf32> to vector<10x80xf32>
    %121 = arith.addf %114, %120 : vector<10x80xf32>
    %cst_118 = arith.constant 0.000000e+00 : f32
    %122 = vector.broadcast %cst_118 : f32 to vector<10x80xf32>
    %123 = arith.maximumf %121, %122 : vector<10x80xf32>
    %124 = arith.maximumf %119, %123 : vector<10x80xf32>
    %c0_119 = arith.constant 0 : index
    %c0_120 = arith.constant 0 : index
    %125 = vector.load %arg10[%c0_119, %c0_120] : memref<5x10xf32, #tpu.memory_space<vmem>>, vector<5x10xf32>
    %cst_121 = arith.constant dense<0.000000e+00> : vector<5x80xf32>
    %126 = tpu.matmul %125, %124, %cst_121 {dimension_numbers = #tpu.dot_dimension_numbers<[1], [0], [0], [1], [0, 0, 1, 1], [], []>} : vector<5x10xf32>, vector<10x80xf32>, vector<5x80xf32> -> vector<5x80xf32>
    %c0_122 = arith.constant 0 : index
    %c0_123 = arith.constant 0 : index
    %127 = vector.load %arg11[%c0_122, %c0_123] : memref<5x10xf32, #tpu.memory_space<vmem>>, vector<5x10xf32>
    %cst_124 = arith.constant dense<0.000000e+00> : vector<5x80xf32>
    %128 = tpu.matmul %127, %124, %cst_124 {dimension_numbers = #tpu.dot_dimension_numbers<[1], [0], [0], [1], [0, 0, 1, 1], [], []>} : vector<5x10xf32>, vector<10x80xf32>, vector<5x80xf32> -> vector<5x80xf32>
    %129 = arith.maximumf %126, %128 : vector<5x80xf32>
    %c0_125 = arith.constant 0 : index
    %c0_126 = arith.constant 0 : index
    %130 = vector.load %arg20[%c0_125, %c0_126] : memref<5x80xf32, #tpu.memory_space<vmem>>, vector<5x80xf32>
    tpu.vector_store %arg20[%c0_125, %c0_126], %129 {strides = array<i32>} : memref<5x80xf32, #tpu.memory_space<vmem>>, vector<5x80xf32>,
    %cst_127 = arith.constant 0.000000e+00 : f32
    %131 = vector.broadcast %cst_127 : f32 to vector<1x120xf32>
    %c0_128 = arith.constant 0 : index
    %c0_129 = arith.constant 0 : index
    %132 = vector.load %arg20[%c0_128, %c0_129] : memref<5x80xf32, #tpu.memory_space<vmem>>, vector<1x80xf32>
    %c0_130 = arith.constant 0 : index
    %c0_131 = arith.constant 0 : index
    %c0_132 = arith.constant 0 : index
    %133 = vector.load %arg12[%c0_130, %c0_131, %c0_132] : memref<5x80x120xf32, #tpu.memory_space<vmem>>, vector<1x80x120xf32>
    %134 = vector.shape_cast %133 : vector<1x80x120xf32> to vector<80x120xf32>
    %cst_133 = arith.constant dense<0.000000e+00> : vector<1x120xf32>
    %135 = tpu.matmul %132, %134, %cst_133 {dimension_numbers = #tpu.dot_dimension_numbers<[1], [0], [0], [1], [0, 0, 1, 1], [], []>} : vector<1x80xf32>, vector<80x120xf32>, vector<1x120xf32> -> vector<1x120xf32>
    %136 = arith.addf %131, %135 : vector<1x120xf32>
    %c1_134 = arith.constant 1 : index
    %c0_135 = arith.constant 0 : index
    %137 = vector.load %arg20[%c1_134, %c0_135] : memref<5x80xf32, #tpu.memory_space<vmem>>, vector<1x80xf32>
    %c1_136 = arith.constant 1 : index
    %c0_137 = arith.constant 0 : index
    %c0_138 = arith.constant 0 : index
    %138 = vector.load %arg12[%c1_136, %c0_137, %c0_138] : memref<5x80x120xf32, #tpu.memory_space<vmem>>, vector<1x80x120xf32>
    %139 = vector.shape_cast %138 : vector<1x80x120xf32> to vector<80x120xf32>
    %cst_139 = arith.constant dense<0.000000e+00> : vector<1x120xf32>
    %140 = tpu.matmul %137, %139, %cst_139 {dimension_numbers = #tpu.dot_dimension_numbers<[1], [0], [0], [1], [0, 0, 1, 1], [], []>} : vector<1x80xf32>, vector<80x120xf32>, vector<1x120xf32> -> vector<1x120xf32>
    %141 = arith.addf %136, %140 : vector<1x120xf32>
    %c2_140 = arith.constant 2 : index
    %c0_141 = arith.constant 0 : index
    %142 = vector.load %arg20[%c2_140, %c0_141] : memref<5x80xf32, #tpu.memory_space<vmem>>, vector<1x80xf32>
    %c2_142 = arith.constant 2 : index
    %c0_143 = arith.constant 0 : index
    %c0_144 = arith.constant 0 : index
    %143 = vector.load %arg12[%c2_142, %c0_143, %c0_144] : memref<5x80x120xf32, #tpu.memory_space<vmem>>, vector<1x80x120xf32>
    %144 = vector.shape_cast %143 : vector<1x80x120xf32> to vector<80x120xf32>
    %cst_145 = arith.constant dense<0.000000e+00> : vector<1x120xf32>
    %145 = tpu.matmul %142, %144, %cst_145 {dimension_numbers = #tpu.dot_dimension_numbers<[1], [0], [0], [1], [0, 0, 1, 1], [], []>} : vector<1x80xf32>, vector<80x120xf32>, vector<1x120xf32> -> vector<1x120xf32>
    %146 = arith.addf %141, %145 : vector<1x120xf32>
    %c3_146 = arith.constant 3 : index
    %c0_147 = arith.constant 0 : index
    %147 = vector.load %arg20[%c3_146, %c0_147] : memref<5x80xf32, #tpu.memory_space<vmem>>, vector<1x80xf32>
    %c3_148 = arith.constant 3 : index
    %c0_149 = arith.constant 0 : index
    %c0_150 = arith.constant 0 : index
    %148 = vector.load %arg12[%c3_148, %c0_149, %c0_150] : memref<5x80x120xf32, #tpu.memory_space<vmem>>, vector<1x80x120xf32>
    %149 = vector.shape_cast %148 : vector<1x80x120xf32> to vector<80x120xf32>
    %cst_151 = arith.constant dense<0.000000e+00> : vector<1x120xf32>
    %150 = tpu.matmul %147, %149, %cst_151 {dimension_numbers = #tpu.dot_dimension_numbers<[1], [0], [0], [1], [0, 0, 1, 1], [], []>} : vector<1x80xf32>, vector<80x120xf32>, vector<1x120xf32> -> vector<1x120xf32>
    %151 = arith.addf %146, %150 : vector<1x120xf32>
    %c4_152 = arith.constant 4 : index
    %c0_153 = arith.constant 0 : index
    %152 = vector.load %arg20[%c4_152, %c0_153] : memref<5x80xf32, #tpu.memory_space<vmem>>, vector<1x80xf32>
    %c4_154 = arith.constant 4 : index
    %c0_155 = arith.constant 0 : index
    %c0_156 = arith.constant 0 : index
    %153 = vector.load %arg12[%c4_154, %c0_155, %c0_156] : memref<5x80x120xf32, #tpu.memory_space<vmem>>, vector<1x80x120xf32>
    %154 = vector.shape_cast %153 : vector<1x80x120xf32> to vector<80x120xf32>
    %cst_157 = arith.constant dense<0.000000e+00> : vector<1x120xf32>
    %155 = tpu.matmul %152, %154, %cst_157 {dimension_numbers = #tpu.dot_dimension_numbers<[1], [0], [0], [1], [0, 0, 1, 1], [], []>} : vector<1x80xf32>, vector<80x120xf32>, vector<1x120xf32> -> vector<1x120xf32>
    %156 = arith.addf %151, %155 : vector<1x120xf32>
    %c0_158 = arith.constant 0 : index
    %c0_159 = arith.constant 0 : index
    %157 = vector.load %arg13[%c0_158, %c0_159] : memref<1x120xf32, #tpu.memory_space<vmem>>, vector<1x120xf32>
    %158 = arith.addf %156, %157 : vector<1x120xf32>
    %cst_160 = arith.constant 0.000000e+00 : f32
    %159 = vector.broadcast %cst_160 : f32 to vector<1x120xf32>
    %160 = arith.maximumf %158, %159 : vector<1x120xf32>
    %c0_161 = arith.constant 0 : index
    %c0_162 = arith.constant 0 : index
    %161 = vector.load %arg14[%c0_161, %c0_162] : memref<120x84xf32, #tpu.memory_space<vmem>>, vector<120x84xf32>
    %cst_163 = arith.constant dense<0.000000e+00> : vector<1x84xf32>
    %162 = tpu.matmul %160, %161, %cst_163 {dimension_numbers = #tpu.dot_dimension_numbers<[1], [0], [0], [1], [0, 0, 1, 1], [], []>} : vector<1x120xf32>, vector<120x84xf32>, vector<1x84xf32> -> vector<1x84xf32>
    %c0_164 = arith.constant 0 : index
    %c0_165 = arith.constant 0 : index
    %163 = vector.load %arg15[%c0_164, %c0_165] : memref<1x84xf32, #tpu.memory_space<vmem>>, vector<1x84xf32>
    %164 = arith.addf %162, %163 : vector<1x84xf32>
    %cst_166 = arith.constant 0.000000e+00 : f32
    %165 = vector.broadcast %cst_166 : f32 to vector<1x84xf32>
    %166 = arith.maximumf %164, %165 : vector<1x84xf32>
    %c0_167 = arith.constant 0 : index
    %c0_168 = arith.constant 0 : index
    %167 = vector.load %arg16[%c0_167, %c0_168] : memref<84x10xf32, #tpu.memory_space<vmem>>, vector<84x10xf32>
    %cst_169 = arith.constant dense<0.000000e+00> : vector<1x10xf32>
    %168 = tpu.matmul %166, %167, %cst_169 {dimension_numbers = #tpu.dot_dimension_numbers<[1], [0], [0], [1], [0, 0, 1, 1], [], []>} : vector<1x84xf32>, vector<84x10xf32>, vector<1x10xf32> -> vector<1x10xf32>
    %c0_170 = arith.constant 0 : index
    %c0_171 = arith.constant 0 : index
    %169 = vector.load %arg17[%c0_170, %c0_171] : memref<1x10xf32, #tpu.memory_space<vmem>>, vector<1x10xf32>
    %170 = arith.addf %168, %169 : vector<1x10xf32>
    %c0_172 = arith.constant 0 : index
    %c0_173 = arith.constant 0 : index
    %c0_174 = arith.constant 0 : index
    %171 = vector.load %arg18[%c0_172, %c0_173, %c0_174] : memref<1x1x10xf32, #tpu.memory_space<vmem>>, vector<1x1x10xf32>
    %172 = vector.shape_cast %171 : vector<1x1x10xf32> to vector<1x10xf32>
    %173 = vector.shape_cast %170 : vector<1x10xf32> to vector<1x1x10xf32>
    tpu.vector_store %arg18[%c0_172, %c0_173, %c0_174], %173 {strides = array<i32>} : memref<1x1x10xf32, #tpu.memory_space<vmem>>, vector<1x1x10xf32>,
    return
  }
  func.func @transform_0(%arg0: i32) -> (i32, i32, i32) {
    %c0_i32 = arith.constant 0 : i32
    %c0_i32_0 = arith.constant 0 : i32
    %c0_i32_1 = arith.constant 0 : i32
    return %arg0, %c0_i32, %c0_i32_0 : i32, i32, i32
  }
  func.func @transform_1(%arg0: i32) -> (i32, i32, i32) {
    %c0_i32 = arith.constant 0 : i32
    %c0_i32_0 = arith.constant 0 : i32
    %c0_i32_1 = arith.constant 0 : i32
    %c0_i32_2 = arith.constant 0 : i32
    return %c0_i32, %c0_i32_0, %c0_i32_1 : i32, i32, i32
  }
  func.func @transform_2(%arg0: i32) -> (i32, i32, i32) {
    %c0_i32 = arith.constant 0 : i32
    %c0_i32_0 = arith.constant 0 : i32
    %c0_i32_1 = arith.constant 0 : i32
    %c0_i32_2 = arith.constant 0 : i32
    return %c0_i32, %c0_i32_0, %c0_i32_1 : i32, i32, i32
  }
  func.func @transform_3(%arg0: i32) -> (i32, i32) {
    %c0_i32 = arith.constant 0 : i32
    %c0_i32_0 = arith.constant 0 : i32
    %c0_i32_1 = arith.constant 0 : i32
    return %c0_i32, %c0_i32_0 : i32, i32
  }
  func.func @transform_4(%arg0: i32) -> (i32, i32) {
    %c0_i32 = arith.constant 0 : i32
    %c0_i32_0 = arith.constant 0 : i32
    %c0_i32_1 = arith.constant 0 : i32
    return %c0_i32, %c0_i32_0 : i32, i32
  }
  func.func @transform_5(%arg0: i32) -> (i32, i32) {
    %c0_i32 = arith.constant 0 : i32
    %c0_i32_0 = arith.constant 0 : i32
    %c0_i32_1 = arith.constant 0 : i32
    return %c0_i32, %c0_i32_0 : i32, i32
  }
  func.func @transform_6(%arg0: i32) -> (i32, i32, i32) {
    %c0_i32 = arith.constant 0 : i32
    %c0_i32_0 = arith.constant 0 : i32
    %c0_i32_1 = arith.constant 0 : i32
    %c0_i32_2 = arith.constant 0 : i32
    return %c0_i32, %c0_i32_0, %c0_i32_1 : i32, i32, i32
  }
  func.func @transform_7(%arg0: i32) -> (i32, i32, i32) {
    %c0_i32 = arith.constant 0 : i32
    %c0_i32_0 = arith.constant 0 : i32
    %c0_i32_1 = arith.constant 0 : i32
    %c0_i32_2 = arith.constant 0 : i32
    return %c0_i32, %c0_i32_0, %c0_i32_1 : i32, i32, i32
  }
  func.func @transform_8(%arg0: i32) -> (i32, i32) {
    %c0_i32 = arith.constant 0 : i32
    %c0_i32_0 = arith.constant 0 : i32
    %c0_i32_1 = arith.constant 0 : i32
    return %c0_i32, %c0_i32_0 : i32, i32
  }
  func.func @transform_9(%arg0: i32) -> (i32, i32) {
    %c0_i32 = arith.constant 0 : i32
    %c0_i32_0 = arith.constant 0 : i32
    %c0_i32_1 = arith.constant 0 : i32
    return %c0_i32, %c0_i32_0 : i32, i32
  }
  func.func @transform_10(%arg0: i32) -> (i32, i32) {
    %c0_i32 = arith.constant 0 : i32
    %c0_i32_0 = arith.constant 0 : i32
    %c0_i32_1 = arith.constant 0 : i32
    return %c0_i32, %c0_i32_0 : i32, i32
  }
  func.func @transform_11(%arg0: i32) -> (i32, i32, i32) {
    %c0_i32 = arith.constant 0 : i32
    %c0_i32_0 = arith.constant 0 : i32
    %c0_i32_1 = arith.constant 0 : i32
    %c0_i32_2 = arith.constant 0 : i32
    return %c0_i32, %c0_i32_0, %c0_i32_1 : i32, i32, i32
  }
  func.func @transform_12(%arg0: i32) -> (i32, i32) {
    %c0_i32 = arith.constant 0 : i32
    %c0_i32_0 = arith.constant 0 : i32
    %c0_i32_1 = arith.constant 0 : i32
    return %c0_i32, %c0_i32_0 : i32, i32
  }
  func.func @transform_13(%arg0: i32) -> (i32, i32) {
    %c0_i32 = arith.constant 0 : i32
    %c0_i32_0 = arith.constant 0 : i32
    %c0_i32_1 = arith.constant 0 : i32
    return %c0_i32, %c0_i32_0 : i32, i32
  }
  func.func @transform_14(%arg0: i32) -> (i32, i32) {
    %c0_i32 = arith.constant 0 : i32
    %c0_i32_0 = arith.constant 0 : i32
    %c0_i32_1 = arith.constant 0 : i32
    return %c0_i32, %c0_i32_0 : i32, i32
  }
  func.func @transform_15(%arg0: i32) -> (i32, i32) {
    %c0_i32 = arith.constant 0 : i32
    %c0_i32_0 = arith.constant 0 : i32
    %c0_i32_1 = arith.constant 0 : i32
    return %c0_i32, %c0_i32_0 : i32, i32
  }
  func.func @transform_16(%arg0: i32) -> (i32, i32) {
    %c0_i32 = arith.constant 0 : i32
    %c0_i32_0 = arith.constant 0 : i32
    %c0_i32_1 = arith.constant 0 : i32
    return %c0_i32, %c0_i32_0 : i32, i32
  }
  func.func @transform_17(%arg0: i32) -> (i32, i32, i32) {
    %c0_i32 = arith.constant 0 : i32
    %c0_i32_0 = arith.constant 0 : i32
    %c0_i32_1 = arith.constant 0 : i32
    return %arg0, %c0_i32, %c0_i32_0 : i32, i32, i32
  }
}

</mosaic_0001>

<bundles_post_ra>
// kernel: net_forward.1
= control target key start
LH: loop header
LB: loop body
LE: loop exit
PB: predicated region body
PF: predicated region fallthrough
CT: control target
= control target key end

     0   :  { %s3680_s0 = inlined_call_operand.vmem [shape: f32[2,32,96], index: 0, kind: input, shape index: {}]   ;;  %s3681_s1 = inlined_call_operand.vmem [shape: f32[5,96,84], index: 1, kind: input, shape index: {}]   ;;  %s3682_s2 = inlined_call_operand.vmem [shape: f32[5,96,84], index: 2, kind: input, shape index: {}]   ;;  %s3683_s3 = inlined_call_operand.vmem [shape: f32[1,84], index: 3, kind: input, shape index: {}]   ;;  %s3684_s4 = inlined_call_operand.vmem [shape: f32[14,28], index: 4, kind: input, shape index: {}]   ;;  %s3685_s5 = inlined_call_operand.vmem [shape: f32[14,28], index: 5, kind: input, shape index: {}]   ;;  %s3686_s6 = inlined_call_operand.vmem [shape: f32[5,84,80], index: 6, kind: input, shape index: {}]   ;;  %s3687_s7 = inlined_call_operand.vmem [shape: f32[5,84,80], index: 7, kind: input, shape index: {}]   ;;  %s3688_s8 = inlined_call_operand.vmem [shape: f32[1,80], index: 8, kind: input, shape index: {}]   ;;  %s3689_s9 = inlined_call_operand.vmem [shape: f32[5,10], index: 9, kind: input, shape index: {}]   ;;  %s3690_s10 = inlined_call_operand.vmem [shape: f32[5,10], index: 10, kind: input, shape index: {}]   ;;  %s3691_s11 = inlined_call_operand.vmem [shape: f32[5,80,120], index: 11, kind: input, shape index: {}]   ;;  %s3692_s12 = inlined_call_operand.vmem [shape: f32[1,120], index: 12, kind: input, shape index: {}]   ;;  %s3693_s13 = inlined_call_operand.vmem [shape: f32[120,84], index: 13, kind: input, shape index: {}]   ;;  %s3694_s14 = inlined_call_operand.vmem [shape: f32[1,84], index: 14, kind: input, shape index: {}]   ;;  %s3695_s15 = inlined_call_operand.vmem [shape: f32[84,10], index: 15, kind: input, shape index: {}]   ;;  %s3696_s16 = inlined_call_operand.vmem [shape: f32[1,10], index: 16, kind: input, shape index: {}]   ;;  %s3697_s17 = inlined_call_operand.hbm [shape: f32[2,1,10], index: 17, kind: output, shape index: {}]  }
   0x1   :  { %3707 = sst [smem:[#allocation14_spill]] %s3680_s0 }
   0x2   :  { %3708 = sst [smem:[#allocation15_spill]] %s3681_s1 }
   0x3   :  { %3709 = sst [smem:[#allocation16_spill]] %s3682_s2 }
   0x4   :  { %3710 = sst [smem:[#allocation17_spill]] %s3696_s16 }
   0x5   :  { %22 = vsyncpa [#allocation5], 0 }
   0x6   :  { %24 = vsyncpa [#allocation5 + $0x1], 0  ;;  %s2524_s24 = smov 0   ;;  %s2526_s25 = smov 0  }
   0x7   :  { %s2528_s26 = smov 0   ;;  %s2530_s27 = smov 0  }
   0x8 LB: > { %3711 = sst [smem:[#allocation7_spill]] %s2420_s24  ;;  %s2545_s28 = sadd.s32 4294967295, %s2432_s27   ;;  %s2432_s27 = sphi %s2530_s27, %s3728_s27   ;;  %s2428_s26 = sphi %s2528_s26, %s3730_s26   ;;  %s2424_s25 = sphi %s2526_s25, %s3732_s25   ;;  %s2420_s24 = sphi %s2524_s24, %s3731_s24  }
   0x9   : > { %3712 = sst [smem:[#allocation8_spill]] %s2428_s26  ;;  %s1996_s29 = sadd.s32 4294967294, %s2432_s27  }
   0xa   : > { %3713 = sst [smem:[#allocation9_spill]] %s2432_s27  ;;  %s2549_s0 = sadd.s32 1, %s2432_s27  }
   0xb   : > { %3714 = sst [smem:[#allocation10_spill]] %s2549_s0  ;;  %s399_s30 = sadd.s32 1, %s2428_s26 }
   0xc   : > { %s396_s18 = ssub.s32 %s2432_s27, %s2549_s0  ;;  %p409_p0 = scmp.ne.s32.totalorder %s2428_s26, %s2424_s25 }
   0xd   : > { %p397_p1 = scmp.eq.s32.totalorder %s396_s18, 0  ;;  %p410_p2 = scmp.eq.s32.totalorder %s2545_s28, 1 }
   0xe   : > { %p415_p3 = scmp.ne.s32.totalorder %s2424_s25, %s2420_s24  ;;  %p416_p4 = scmp.eq.s32.totalorder %s1996_s29, 1 }
   0xf   : > { %s2560_s19 = scalar_select %p397_p1, %s2428_s26, %s399_s30  }
  0x10   : > { %p2562_p5 = por %p410_p2, %p409_p0  ;;  %p2566_p6 = por %p416_p4, %p415_p3 }
  0x11   : > { %3715 = sst [smem:[#allocation11_spill]] %s2560_s19  ;;  %p1999_p7 = scmp.ge.s32.totalorder %s2432_s27, 1 }
  0x12   : > { %s3716_s1 = scalar_select %p2562_p5, 1, 0 }
  0x13   : > { %s3718_s20 = scalar_select %p2566_p6, 1, 0 }
  0x14   : > { %3717 = sst [smem:[#allocation12_spill]] %s3716_s1  ;;  %p490_p8 = scmp.lt.s32.totalorder %s2432_s27, 3 }
  0x15   : > { %3719 = sst [smem:[#allocation13_spill]] %s3718_s20 }
  0x16   : > { %p491_p9 = pnand %p1999_p7, %p490_p8 }
  0x17   : > { %s3720_s23 = sld [smem:[#allocation15_spill]] (!%p491_p9)  ;;  %p541_p10 = scmp.lt.s32.totalorder (!%p491_p9), %s2545_s28, 1 }
  0x18   : > { %494 = sbr.rel (%p491_p9) target bundleno = 1166 (0x48e), region = 88  ;;  %s3721_s2 = sld [smem:[#allocation16_spill]] (!%p491_p9) }
  0x19   : > { %s3722_s1 = sld [smem:[#allocation14_spill]] (!%p491_p9)  ;;  %s539_s27 = sand.u32 (!%p491_p9), 1, %s2424_s25  }
  0x1a   : > { %s1937_s18 = scalar_lea.hbm (!%p491_p9), %s3697_s17, %s2545_s28  ;;  %s3723_s30 = sld [smem:[#allocation17_spill]] (!%p491_p9) }
  0x1b   : > { %s540_s26 = scalar_lea.vmem (!%p491_p9), [#allocation4], %s539_s27  ;;  %s2390_s22 = scalar_lea.hbm (!%p491_p9), %s3697_s17, 2 }
  0x1d   : > { %v2013_v0 = vld [vmem:[%s3720_s23 + $0xb8] sm:$0xff]  ;;  %v2012_v4 = vld [vmem:[%s3720_s23 + $0xb0] sm:$0xff]  ;;  %v2011_v8 = vld [vmem:[%s3720_s23 + $0xa8] sm:$0xff]  ;;  %s2666_s21 = scalar_select %p541_p10, %s2545_s28, 1  ;;  %vm591_vm0 = vcmask 785408   ;;  %vm1102_vm1 = vcmask 1043456  }
  0x1e   : > { %v561_v1 = vld [vmem:[%s3720_s23 + $0x58] sm:$0xff]  ;;  %608 = vmatpush.msra.mxu0 %v2013_v0  ;;  %v560_v5 = vld [vmem:[%s3720_s23 + $0x50] sm:$0xff]  ;;  %v559_v9 = vld [vmem:[%s3720_s23 + $0x48] sm:$0xff]  ;;  %vm1095_vm2 = vcmask 228352   ;;  %vm1162_vm3 = vcmask 687104   ;;  %vm1164_vm4 = vcmask 685056  }
  0x1f   : > { %v2033_v2 = vld [vmem:[%s3721_s2 + $0xb8] sm:$0xff]  ;;  %649 = vmatpush.msra.mxu1 %v561_v1  ;;  %v2032_v6 = vld [vmem:[%s3721_s2 + $0xb0] sm:$0xff]  ;;  %v2031_v10 = vld [vmem:[%s3721_s2 + $0xa8] sm:$0xff]  ;;  %s2316_s0 = sshll.u32 %s2666_s21, 5  ;;  %vm1615_vm5 = vcmask 1041408   ;;  %vm1611_vm6 = vcmask 80896  }
  0x20   : > { %v573_v3 = vld [vmem:[%s3721_s2 + $0x58] sm:$0xff]  ;;  %691 = vmatpush.msra.mxu2 %v2033_v2  ;;  %v572_v7 = vld [vmem:[%s3721_s2 + $0x50] sm:$0xff]  ;;  %609 = vmatpush.msra.mxu0 %v2012_v4  ;;  %v571_v11 = vld [vmem:[%s3721_s2 + $0x48] sm:$0xff]  ;;  %s2714_s16 = scalar_lea.vmem %s3722_s1, %s2316_s0  ;;  %vm1664_vm7 = vcmask 651264   ;;  %vm1689_vm8 = vcmask 654336   ;;  %vm1863_vm9 = vcmask 982016  }
  0x21   : > { %720 = vmatpush.msra.mxu3 %v573_v3  ;;  %650 = vmatpush.msra.mxu1 %v560_v5  ;;  %v2010_v12 = vld [vmem:[%s3720_s23 + $0xa0] sm:$0xff]  ;;  %v2009_v16 = vld [vmem:[%s3720_s23 + $0x98] sm:$0xff]  ;;  %v2008_v20 = vld [vmem:[%s3720_s23 + $0x90] sm:$0xff]  ;;  %s1939_s1 = sshll.u32 %s540_s26, 4  ;;  %s1941_s0 = sshll.u32 %s1937_s18, 4  ;;  %vm1926_vm10 = vcmask 73728   ;;  %s1940_s1 = int_to_ptr.vmem [resolvable:$true] %s1939_s1  ;;  %s1942_s0 = int_to_ptr.hbm [resolvable:$true] %s1941_s0 }
  0x22   : > { %692 = vmatpush.msra.mxu2 %v2032_v6  ;;  %v558_v13 = vld [vmem:[%s3720_s23 + $0x40] sm:$0xff]  ;;  %610 = vmatpush.msra.mxu0 %v2011_v8  ;;  %v557_v17 = vld [vmem:[%s3720_s23 + $0x38] sm:$0xff]  ;;  %v556_v21 = vld [vmem:[%s3720_s23 + $0x30] sm:$0xff]  ;;  %s2384_s24 = sshra.s32 %s1942_s0, 4  ;;  %s2385_s24 = int_to_ptr.hbm [resolvable:$true] %s2384_s24 }
  0x23   : > { %721 = vmatpush.msra.mxu3 %v572_v7  ;;  %651 = vmatpush.msra.mxu1 %v559_v9  ;;  %v2030_v14 = vld [vmem:[%s3721_s2 + $0xa0] sm:$0xff]  ;;  %v2029_v18 = vld [vmem:[%s3721_s2 + $0x98] sm:$0xff]  ;;  %v2028_v22 = vld [vmem:[%s3721_s2 + $0x90] sm:$0xff]  ;;  %p2391_p0 = scmp.lt.s32.totalorder %s2385_s24, %s3697_s17 }
  0x24   : > { %v570_v15 = vld [vmem:[%s3721_s2 + $0x40] sm:$0xff]  ;;  %693 = vmatpush.msra.mxu2 %v2031_v10  ;;  %611 = vmatpush.msra.mxu0 %v2010_v12  ;;  %v569_v19 = vld [vmem:[%s3721_s2 + $0x38] sm:$0xff]  ;;  %v568_v23 = vld [vmem:[%s3721_s2 + $0x30] sm:$0xff] }
  0x25   : > { %722 = vmatpush.msra.mxu3 %v571_v11  ;;  %652 = vmatpush.msra.mxu1 %v558_v13  ;;  %v2007_v24 = vld [vmem:[%s3720_s23 + $0x88] sm:$0xff]  ;;  %v2006_v28 = vld [vmem:[%s3720_s23 + $0x80] sm:$0xff]  ;;  %v2005_v32 = vld [vmem:[%s3720_s23 + $0x78] sm:$0xff] }
  0x26   : > { %694 = vmatpush.msra.mxu2 %v2030_v14  ;;  %612 = vmatpush.msra.mxu0 %v2009_v16  ;;  %v555_v25 = vld [vmem:[%s3720_s23 + $0x28] sm:$0xff]  ;;  %v554_v29 = vld [vmem:[%s3720_s23 + $0x20] sm:$0xff]  ;;  %v553_v33 = vld [vmem:[%s3720_s23 + $0x18] sm:$0xff] }
  0x27   : > { %723 = vmatpush.msra.mxu3 %v570_v15  ;;  %653 = vmatpush.msra.mxu1 %v557_v17  ;;  %v2027_v26 = vld [vmem:[%s3721_s2 + $0x88] sm:$0xff]  ;;  %v2026_v30 = vld [vmem:[%s3721_s2 + $0x80] sm:$0xff]  ;;  %v2025_v34 = vld [vmem:[%s3721_s2 + $0x78] sm:$0xff] }
  0x28   : > { %695 = vmatpush.msra.mxu2 %v2029_v18  ;;  %613 = vmatpush.msra.mxu0 %v2008_v20  ;;  %v567_v27 = vld [vmem:[%s3721_s2 + $0x28] sm:$0xff]  ;;  %v566_v31 = vld [vmem:[%s3721_s2 + $0x20] sm:$0xff]  ;;  %v565_v35 = vld [vmem:[%s3721_s2 + $0x18] sm:$0xff] }
  0x29   : > { %724 = vmatpush.msra.mxu3 %v569_v19  ;;  %654 = vmatpush.msra.mxu1 %v556_v21  ;;  %v2004_v36 = vld [vmem:[%s3720_s23 + $0x70] sm:$0xff]  ;;  %v2003_v40 = vld [vmem:[%s3720_s23 + $0x68] sm:$0xff]  ;;  %v2002_v44 = vld [vmem:[%s3720_s23 + $0x60] sm:$0xff] }
  0x2a   : > { %696 = vmatpush.msra.mxu2 %v2028_v22  ;;  %614 = vmatpush.msra.mxu0 %v2007_v24  ;;  %v552_v37 = vld [vmem:[%s3720_s23 + $0x10] sm:$0xff]  ;;  %v551_v41 = vld [vmem:[%s3720_s23 + $0x8] sm:$0xff]  ;;  %v550_v45 = vld [vmem:[%s3720_s23] sm:$0xff] }
  0x2b   : > { %725 = vmatpush.msra.mxu3 %v568_v23  ;;  %655 = vmatpush.msra.mxu1 %v555_v25  ;;  %v2024_v38 = vld [vmem:[%s3721_s2 + $0x70] sm:$0xff]  ;;  %v2023_v42 = vld [vmem:[%s3721_s2 + $0x68] sm:$0xff]  ;;  %v2022_v46 = vld [vmem:[%s3721_s2 + $0x60] sm:$0xff] }
  0x2c   : > { %697 = vmatpush.msra.mxu2 %v2027_v26  ;;  %615 = vmatpush.msra.mxu0 %v2006_v28  ;;  %v564_v39 = vld [vmem:[%s3721_s2 + $0x10] sm:$0xff]  ;;  %v563_v43 = vld [vmem:[%s3721_s2 + $0x8] sm:$0xff]  ;;  %v562_v47 = vld [vmem:[%s3721_s2] sm:$0xff] }
  0x2d   : > { %726 = vmatpush.msra.mxu3 %v567_v27  ;;  %656 = vmatpush.msra.mxu1 %v554_v29  ;;  %v574_v48 = vld [vmem:[%s2714_s16 + $0x1] sm:$0xff]  ;;  %v2053_v50 = vld [vmem:[%s3720_s23 + $0x118] sm:$0xff]  ;;  %v2052_v54 = vld [vmem:[%s3720_s23 + $0x110] sm:$0xff] }
  0x2e   : > { %698 = vmatpush.msra.mxu2 %v2026_v30  ;;  %616 = vmatpush.msra.mxu0 %v2005_v32  ;;  %v546_v49 = vld [vmem:[%s2714_s16] sm:$0xff]  ;;  %v2069_v51 = vld [vmem:[%s3721_s2 + $0x118] sm:$0xff]  ;;  %v2068_v55 = vld [vmem:[%s3721_s2 + $0x110] sm:$0xff] }
  0x2f   : > { %727 = vmatpush.msra.mxu3 %v566_v31  ;;  %657 = vmatpush.msra.mxu1 %v553_v33  ;;  %v2085_v52 = vld [vmem:[%s3720_s23 + $0x178] sm:$0xff]  ;;  %v2084_v56 = vld [vmem:[%s3720_s23 + $0x170] sm:$0xff]  ;;  %v2051_v58 = vld [vmem:[%s3720_s23 + $0x108] sm:$0xff] }
  0x30   : > { %699 = vmatpush.msra.mxu2 %v2025_v34  ;;  %617 = vmatpush.msra.mxu0 %v2004_v36  ;;  %v2101_v53 = vld [vmem:[%s3721_s2 + $0x178] sm:$0xff]  ;;  %v2100_v57 = vld [vmem:[%s3721_s2 + $0x170] sm:$0xff]  ;;  %v2067_v59 = vld [vmem:[%s3721_s2 + $0x108] sm:$0xff] }
  0x31   : > { %728 = vmatpush.msra.mxu3 %v565_v35  ;;  %658 = vmatpush.msra.mxu1 %v552_v37  ;;  %v2083_v60 = vld [vmem:[%s3720_s23 + $0x168] sm:$0xff]  ;;  %v2050_v0 = vld [vmem:[%s3720_s23 + $0x100] sm:$0xff]  ;;  %v2049_v4 = vld [vmem:[%s3720_s23 + $0xf8] sm:$0xff] }
  0x32   : > { %700 = vmatpush.msra.mxu2 %v2024_v38  ;;  %618 = vmatpush.msra.mxu0 %v2003_v40  ;;  %v2099_v61 = vld [vmem:[%s3721_s2 + $0x168] sm:$0xff]  ;;  %v2066_v1 = vld [vmem:[%s3721_s2 + $0x100] sm:$0xff]  ;;  %v2065_v5 = vld [vmem:[%s3721_s2 + $0xf8] sm:$0xff] }
  0x33   : > { %729 = vmatpush.msra.mxu3 %v564_v39  ;;  %659 = vmatpush.msra.mxu1 %v551_v41  ;;  %v575_v62 = vld [vmem:[%s2714_s16 + $0x9] sm:$0xff]  ;;  %v2082_v2 = vld [vmem:[%s3720_s23 + $0x160] sm:$0xff]  ;;  %v2081_v6 = vld [vmem:[%s3720_s23 + $0x158] sm:$0xff] }
  0x34   : > { %701 = vmatpush.msra.mxu2 %v2023_v42  ;;  %619 = vmatpush.msra.mxu0 %v2002_v44  ;;  %v547_v63 = vld [vmem:[%s2714_s16 + $0x8] sm:$0xff]  ;;  %v2098_v3 = vld [vmem:[%s3721_s2 + $0x160] sm:$0xff]  ;;  %v2097_v7 = vld [vmem:[%s3721_s2 + $0x158] sm:$0xff] }
  0x35   : > { %730 = vmatpush.msra.mxu3 %v563_v43  ;;  %660 = vmatpush.msra.mxu1 %v550_v45  ;;  %v2048_v8 = vld [vmem:[%s3720_s23 + $0xf0] sm:$0xff]  ;;  %v2047_v14 = vld [vmem:[%s3720_s23 + $0xe8] sm:$0xff]  ;;  %v2046_v18 = vld [vmem:[%s3720_s23 + $0xe0] sm:$0xff] }
  0x36   : > { %702 = vmatpush.msra.mxu2 %v2022_v46  ;;  %2014 = vmatmul.msk.f32.vlgmr.msra.gmra.mxu0 %vm591_vm0, %v574_v48  ;;  %v2064_v9 = vld [vmem:[%s3721_s2 + $0xf0] sm:$0xff]  ;;  %v2063_v15 = vld [vmem:[%s3721_s2 + $0xe8] sm:$0xff]  ;;  %v2062_v19 = vld [vmem:[%s3721_s2 + $0xe0] sm:$0xff] }
  0x37   : > { %731 = vmatpush.msra.mxu3 %v562_v47  ;;  %2018 = vmatmul.msk.f32.vlgmr.msra.gmra.mxu1 %vm591_vm0, %v546_v49  ;;  %v2080_v10 = vld [vmem:[%s3720_s23 + $0x150] sm:$0xff]  ;;  %v2079_v16 = vld [vmem:[%s3720_s23 + $0x148] sm:$0xff]  ;;  %v2078_v20 = vld [vmem:[%s3720_s23 + $0x140] sm:$0xff] }
  0x38   : > { %2034 = vmatmul.msk.f32.vlgmr.msra.gmra.mxu2 %vm591_vm0, %v574_v48  ;;  %2038 = vmatmul.msk.f32.vlgmr.msra.gmra.mxu3 %vm591_vm0, %v546_v49  ;;  %v2096_v11 = vld [vmem:[%s3721_s2 + $0x150] sm:$0xff]  ;;  %v2095_v17 = vld [vmem:[%s3721_s2 + $0x148] sm:$0xff]  ;;  %v2094_v21 = vld [vmem:[%s3721_s2 + $0x140] sm:$0xff] }
  0x39   : > { %778 = vmatpush.msrb.mxu0 %v2053_v50  ;;  %824 = vmatpush.msrb.mxu1 %v2069_v51  ;;  %v576_v12 = vld [vmem:[%s2714_s16 + $0x11] sm:$0xff]  ;;  %v577_v26 = vld [vmem:[%s2714_s16 + $0x19] sm:$0xf]  ;;  %v2043_v32 = vld [vmem:[%s3720_s23 + $0xc8] sm:$0xff] }
  0x3a   : > { %886 = vmatpush.msrb.mxu2 %v2085_v52  ;;  %932 = vmatpush.msrb.mxu3 %v2101_v53  ;;  %v548_v13 = vld [vmem:[%s2714_s16 + $0x10] sm:$0xff]  ;;  %v2045_v22 = vld [vmem:[%s3720_s23 + $0xd8] sm:$0xff]  ;;  %v2059_v33 = vld [vmem:[%s3721_s2 + $0xc8] sm:$0xff] }
  0x3b   : > { %779 = vmatpush.msrb.mxu0 %v2052_v54  ;;  %825 = vmatpush.msrb.mxu1 %v2068_v55  ;;  %v2061_v23 = vld [vmem:[%s3721_s2 + $0xd8] sm:$0xff]  ;;  %v2044_v28 = vld [vmem:[%s3720_s23 + $0xd0] sm:$0xff]  ;;  %v2075_v34 = vld [vmem:[%s3720_s23 + $0x128] sm:$0xff] }
  0x3c   : > { %887 = vmatpush.msrb.mxu2 %v2084_v56  ;;  %933 = vmatpush.msrb.mxu3 %v2100_v57  ;;  %v2077_v24 = vld [vmem:[%s3720_s23 + $0x138] sm:$0xff]  ;;  %v2060_v29 = vld [vmem:[%s3721_s2 + $0xd0] sm:$0xff]  ;;  %v2091_v35 = vld [vmem:[%s3721_s2 + $0x128] sm:$0xff] }
  0x3d   : > { %780 = vmatpush.msrb.mxu0 %v2051_v58  ;;  %826 = vmatpush.msrb.mxu1 %v2067_v59  ;;  %v2093_v25 = vld [vmem:[%s3721_s2 + $0x138] sm:$0xff]  ;;  %v2076_v30 = vld [vmem:[%s3720_s23 + $0x130] sm:$0xff]  ;;  %v2042_v36 = vld [vmem:[%s3720_s23 + $0xc0] sm:$0xff] }
  0x3e   : > { %888 = vmatpush.msrb.mxu2 %v2083_v60  ;;  %934 = vmatpush.msrb.mxu3 %v2099_v61  ;;  %v549_v27 = vld [vmem:[%s2714_s16 + $0x18] sm:$0xf]  ;;  %v2092_v31 = vld [vmem:[%s3721_s2 + $0x130] sm:$0xff]  ;;  %v2058_v37 = vld [vmem:[%s3721_s2 + $0xc0] sm:$0xff] }
  0x3f   : > { %2015 = vmatmul.msk.f32.gmra.mxu0 %vm591_vm0, %v575_v62  ;;  %2019 = vmatmul.msk.f32.gmra.mxu1 %vm591_vm0, %v547_v63  ;;  %v2074_v38 = vld [vmem:[%s3720_s23 + $0x120] sm:$0xff]  ;;  %v2117_v42 = vld [vmem:[%s3720_s23 + $0x1d8] sm:$0xff]  ;;  %v2116_v44 = vld [vmem:[%s3720_s23 + $0x1d0] sm:$0xff] }
  0x40   : > { %2035 = vmatmul.msk.f32.gmra.mxu2 %vm591_vm0, %v575_v62  ;;  %2039 = vmatmul.msk.f32.gmra.mxu3 %vm591_vm0, %v547_v63  ;;  %v2090_v39 = vld [vmem:[%s3721_s2 + $0x120] sm:$0xff]  ;;  %v2133_v43 = vld [vmem:[%s3721_s2 + $0x1d8] sm:$0xff]  ;;  %v2132_v45 = vld [vmem:[%s3721_s2 + $0x1d0] sm:$0xff] }
  0x41   : > { %781 = vmatpush.msrb.mxu0 %v2050_v0  ;;  %827 = vmatpush.msrb.mxu1 %v2066_v1  ;;  %v745_v40 = vld [vmem:[%s2714_s16 + $0x2] sm:$0xff]  ;;  %v746_v48 = vld [vmem:[%s2714_s16 + $0xa] sm:$0xff]  ;;  %v2113_v52 = vld [vmem:[%s3720_s23 + $0x1b8] sm:$0xff] }
  0x42   : > { %889 = vmatpush.msrb.mxu2 %v2082_v2  ;;  %935 = vmatpush.msrb.mxu3 %v2098_v3  ;;  %v853_v41 = vld [vmem:[%s2714_s16 + $0x3] sm:$0xff]  ;;  %v854_v49 = vld [vmem:[%s2714_s16 + $0xb] sm:$0xff]  ;;  %v2129_v53 = vld [vmem:[%s3721_s2 + $0x1b8] sm:$0xff] }
  0x43   : > { %782 = vmatpush.msrb.mxu0 %v2049_v4  ;;  %828 = vmatpush.msrb.mxu1 %v2065_v5  ;;  %v2115_v46 = vld [vmem:[%s3720_s23 + $0x1c8] sm:$0xff]  ;;  %v2114_v50 = vld [vmem:[%s3720_s23 + $0x1c0] sm:$0xff]  ;;  %v2112_v54 = vld [vmem:[%s3720_s23 + $0x1b0] sm:$0xff] }
  0x44   : > { %890 = vmatpush.msrb.mxu2 %v2081_v6  ;;  %936 = vmatpush.msrb.mxu3 %v2097_v7  ;;  %v2131_v47 = vld [vmem:[%s3721_s2 + $0x1c8] sm:$0xff]  ;;  %v2130_v51 = vld [vmem:[%s3721_s2 + $0x1c0] sm:$0xff]  ;;  %v2128_v55 = vld [vmem:[%s3721_s2 + $0x1b0] sm:$0xff] }
  0x45   : > { %783 = vmatpush.msrb.mxu0 %v2048_v8  ;;  %829 = vmatpush.msrb.mxu1 %v2064_v9  ;;  %v747_v56 = vld [vmem:[%s2714_s16 + $0x12] sm:$0xff]  ;;  %v2111_v58 = vld [vmem:[%s3720_s23 + $0x1a8] sm:$0xff]  ;;  %v2110_v60 = vld [vmem:[%s3720_s23 + $0x1a0] sm:$0xff] }
  0x46   : > { %891 = vmatpush.msrb.mxu2 %v2080_v10  ;;  %937 = vmatpush.msrb.mxu3 %v2096_v11  ;;  %v855_v57 = vld [vmem:[%s2714_s16 + $0x13] sm:$0xff]  ;;  %v2127_v59 = vld [vmem:[%s3721_s2 + $0x1a8] sm:$0xff]  ;;  %v2126_v61 = vld [vmem:[%s3721_s2 + $0x1a0] sm:$0xff] }
  0x47   : > { %2016 = vmatmul.msk.f32.gmra.mxu0 %vm591_vm0, %v576_v12  ;;  %2020 = vmatmul.msk.f32.gmra.mxu1 %vm591_vm0, %v548_v13  ;;  %v2109_v62 = vld [vmem:[%s3720_s23 + $0x198] sm:$0xff]  ;;  %v2108_v2 = vld [vmem:[%s3720_s23 + $0x190] sm:$0xff]  ;;  %v2107_v4 = vld [vmem:[%s3720_s23 + $0x188] sm:$0xff] }
  0x48   : > { %2036 = vmatmul.msk.f32.gmra.mxu2 %vm591_vm0, %v576_v12  ;;  %2040 = vmatmul.msk.f32.gmra.mxu3 %vm591_vm0, %v548_v13  ;;  %v2125_v63 = vld [vmem:[%s3721_s2 + $0x198] sm:$0xff]  ;;  %v2124_v3 = vld [vmem:[%s3721_s2 + $0x190] sm:$0xff]  ;;  %v2123_v5 = vld [vmem:[%s3721_s2 + $0x188] sm:$0xff] }
  0x49   : > { %784 = vmatpush.msrb.mxu0 %v2047_v14  ;;  %830 = vmatpush.msrb.mxu1 %v2063_v15  ;;  %v748_v0 = vld [vmem:[%s2714_s16 + $0x1a] sm:$0xf]  ;;  %v2106_v6 = vld [vmem:[%s3720_s23 + $0x180] sm:$0xff]  ;;  %v962_v10 = vld [vmem:[%s2714_s16 + $0xc] sm:$0xff] }
  0x4a   : > { %892 = vmatpush.msrb.mxu2 %v2079_v16  ;;  %938 = vmatpush.msrb.mxu3 %v2095_v17  ;;  %v856_v1 = vld [vmem:[%s2714_s16 + $0x1b] sm:$0xf]  ;;  %v2122_v7 = vld [vmem:[%s3721_s2 + $0x180] sm:$0xff]  ;;  %s2386_s2 = scalar_lea.hbm %s2385_s24, 1 }
  0x4b   : > { %785 = vmatpush.msrb.mxu0 %v2046_v18  ;;  %831 = vmatpush.msrb.mxu1 %v2062_v19  ;;  %v961_v8 = vld [vmem:[%s2714_s16 + $0x4] sm:$0xff]  ;;  %v964_v9 = vld [vmem:[%s2714_s16 + $0x1c] sm:$0xf]  ;;  %v963_v11 = vld [vmem:[%s2714_s16 + $0x14] sm:$0xff]  ;;  %s1929_s16 = scalar_lea.sflag [#allocation5], %s539_s27  ;;  %p2387_p11 = scmp.ne.s32.totalorder %s2385_s24, %s2386_s2 }
  0x4c   : > { %893 = vmatpush.msrb.mxu2 %v2078_v20  ;;  %939 = vmatpush.msrb.mxu3 %v2094_v21  ;;  %p2392_p1 = scmp.lt.s32.totalorder %s2390_s22, %s2386_s2 }
  0x4d   : > { %786 = vmatpush.msrb.mxu0 %v2045_v22  ;;  %832 = vmatpush.msrb.mxu1 %v2061_v23  ;;  %p2388_p12 = pnand %p2387_p11, %p2562_p5 }
  0x4e   : > { %894 = vmatpush.msrb.mxu2 %v2077_v24  ;;  %940 = vmatpush.msrb.mxu3 %v2093_v25  ;;  %p2393_p2 = por %p2392_p1, %p2391_p0 }
  0x4f   : > { %2017 = vmatmul.msk.f32.gmra.mxu0 %vm591_vm0, %v577_v26  ;;  %2021 = vmatmul.msk.f32.gmra.mxu1 %vm591_vm0, %v549_v27  ;;  %p2389_p13 = pneg %p2388_p12 }
  0x50   : > { %2037 = vmatmul.msk.f32.gmra.mxu2 %vm591_vm0, %v577_v26  ;;  %2041 = vmatmul.msk.f32.gmra.mxu3 %vm591_vm0, %v549_v27 }
  0x51   : > { %787 = vmatpush.msrb.mxu0 %v2044_v28  ;;  %833 = vmatpush.msrb.mxu1 %v2060_v29  ;;  %p2394_p3 = pnand %p2393_p2, %p2389_p13 }
  0x52   : > { %895 = vmatpush.msrb.mxu2 %v2076_v30  ;;  %941 = vmatpush.msrb.mxu3 %v2092_v31 }
  0x53   : > { %788 = vmatpush.msrb.mxu0 %v2043_v32  ;;  %834 = vmatpush.msrb.mxu1 %v2059_v33 }
  0x54   : > { %896 = vmatpush.msrb.mxu2 %v2075_v34  ;;  %942 = vmatpush.msrb.mxu3 %v2091_v35 }
  0x55   : > { %789 = vmatpush.msrb.mxu0 %v2042_v36  ;;  %835 = vmatpush.msrb.mxu1 %v2058_v37 }
  0x56   : > { %897 = vmatpush.msrb.mxu2 %v2074_v38  ;;  %943 = vmatpush.msrb.mxu3 %v2090_v39 }
  0x57   : > { %2054 = vmatmul.msk.f32.vlgmr.msrb.gmra.mxu0 %vm591_vm0, %v745_v40  ;;  %2070 = vmatmul.msk.f32.vlgmr.msrb.gmra.mxu1 %vm591_vm0, %v745_v40 }
  0x58   : > { %2086 = vmatmul.msk.f32.vlgmr.msrb.gmra.mxu2 %vm591_vm0, %v853_v41  ;;  %2102 = vmatmul.msk.f32.vlgmr.msrb.gmra.mxu3 %vm591_vm0, %v853_v41 }
  0x59   : > { %994 = vmatpush.msra.mxu0 %v2117_v42  ;;  %2317 = vmatpush.msra.mxu3 %v2117_v42 }
  0x5a   : > { %1040 = vmatpush.msra.mxu1 %v2133_v43 }
  0x5b   : > { %995 = vmatpush.msra.mxu0 %v2116_v44  ;;  %2318 = vmatpush.msra.mxu3 %v2116_v44 }
  0x5c   : > { %1041 = vmatpush.msra.mxu1 %v2132_v45 }
  0x5d   : > { %996 = vmatpush.msra.mxu0 %v2115_v46  ;;  %2319 = vmatpush.msra.mxu3 %v2115_v46 }
  0x5e   : > { %1042 = vmatpush.msra.mxu1 %v2131_v47 }
  0x5f   : > { %2055 = vmatmul.msk.f32.gmra.mxu0 %vm591_vm0, %v746_v48  ;;  %2071 = vmatmul.msk.f32.gmra.mxu1 %vm591_vm0, %v746_v48  ;;  %v3007_v48 = vld [vmem:[%s3683_s3] ss:$0 sm:$0xff] }
  0x60   : > { %2087 = vmatmul.msk.f32.gmra.mxu2 %vm591_vm0, %v854_v49  ;;  %2103 = vmatmul.msk.f32.gmra.mxu3 %vm591_vm0, %v854_v49 }
  0x61   : > { %997 = vmatpush.msra.mxu0 %v2114_v50  ;;  %2320 = vmatpush.msra.mxu3 %v2114_v50 }
  0x62   : > { %1043 = vmatpush.msra.mxu1 %v2130_v51 }
  0x63   : > { %998 = vmatpush.msra.mxu0 %v2113_v52  ;;  %2321 = vmatpush.msra.mxu3 %v2113_v52 }
  0x64   : > { %1044 = vmatpush.msra.mxu1 %v2129_v53 }
  0x65   : > { %999 = vmatpush.msra.mxu0 %v2112_v54  ;;  %2322 = vmatpush.msra.mxu3 %v2112_v54 }
  0x66   : > { %1045 = vmatpush.msra.mxu1 %v2128_v55 }
  0x67   : > { %2056 = vmatmul.msk.f32.gmra.mxu0 %vm591_vm0, %v747_v56  ;;  %2072 = vmatmul.msk.f32.gmra.mxu1 %vm591_vm0, %v747_v56 }
  0x68   : > { %2088 = vmatmul.msk.f32.gmra.mxu2 %vm591_vm0, %v855_v57  ;;  %2104 = vmatmul.msk.f32.gmra.mxu3 %vm591_vm0, %v855_v57 }
  0x69   : > { %1000 = vmatpush.msra.mxu0 %v2111_v58  ;;  %2323 = vmatpush.msra.mxu3 %v2111_v58 }
  0x6a   : > { %1046 = vmatpush.msra.mxu1 %v2127_v59 }
  0x6b   : > { %1001 = vmatpush.msra.mxu0 %v2110_v60  ;;  %2324 = vmatpush.msra.mxu3 %v2110_v60 }
  0x6c   : > { %1047 = vmatpush.msra.mxu1 %v2126_v61 }
  0x6d   : > { %1002 = vmatpush.msra.mxu0 %v2109_v62  ;;  %2325 = vmatpush.msra.mxu3 %v2109_v62 }
  0x6e   : > { %1048 = vmatpush.msra.mxu1 %v2125_v63 }
  0x6f   : > { %2057 = vmatmul.msk.f32.gmra.mxu0 %vm591_vm0, %v748_v0  ;;  %2073 = vmatmul.msk.f32.gmra.mxu1 %vm591_vm0, %v748_v0 }
  0x70   : > { %2089 = vmatmul.msk.f32.gmra.mxu2 %vm591_vm0, %v856_v1  ;;  %2105 = vmatmul.msk.f32.gmra.mxu3 %vm591_vm0, %v856_v1 }
  0x71   : > { %1003 = vmatpush.msra.mxu0 %v2108_v2  ;;  %2326 = vmatpush.msra.mxu3 %v2108_v2 }
  0x72   : > { %1049 = vmatpush.msra.mxu1 %v2124_v3 }
  0x73   : > { %1004 = vmatpush.msra.mxu0 %v2107_v4  ;;  %2327 = vmatpush.msra.mxu3 %v2107_v4 }
  0x74   : > { %1050 = vmatpush.msra.mxu1 %v2123_v5 }
  0x75   : > { %1005 = vmatpush.msra.mxu0 %v2106_v6  ;;  %2328 = vmatpush.msra.mxu3 %v2106_v6 }
  0x76   : > { %1051 = vmatpush.msra.mxu1 %v2122_v7  ;;  %v1189_v7 = vld [vmem:[%s3687_s7 + $0x50] sm:$0xf] }
  0x77   : > { %2118 = vmatmul.msk.f32.vlgmr.msra.gmra.mxu0 %vm591_vm0, %v961_v8  ;;  %2134 = vmatmul.msk.f32.vlgmr.msra.gmra.mxu1 %vm591_vm0, %v961_v8 }
  0x78   : > { %2121 = vmatmul.msk.f32.vlgmr.msra.gmra.mxu3 %vm591_vm0, %v964_v9  ;;  %2175 = vmatpush.msk.msrb.mxu1 %vm1102_vm1, %v1189_v7  ;;  %v1170_v7 = vld [vmem:[%s3686_s6 + $0x10] sm:$0xff] }
  0x7f   : > { %2119 = vmatmul.msk.f32.gmra.mxu0 %vm591_vm0, %v962_v10  ;;  %2135 = vmatmul.msk.f32.gmra.mxu1 %vm591_vm0, %v962_v10 }
  0x87   : > { %2120 = vmatmul.msk.f32.gmra.mxu0 %vm591_vm0, %v963_v11  ;;  %2136 = vmatmul.msk.f32.gmra.mxu1 %vm591_vm0, %v963_v11 }
  0x8f   : > { %2137 = vmatmul.msk.f32.gmra.mxu1 %vm591_vm0, %v964_v9 }
  0xb3   : > { %v621_v12 = vpop.f32.mrf.mxu0 }
  0xb4   : > { %v662_v13 = vpop.f32.mrf.mxu1 }
  0xb5   : > { %v663_v14 = vadd.f32 %v662_v13, %v621_v12  ;;  %v1188_v12 = vld [vmem:[%s3687_s7 + $0x48] sm:$0xff] }
  0xb6   : > { %1315 = vmatpush.msrb.mxu1 %v1188_v12  ;;  %v1181_v12 = vld [vmem:[%s3687_s7 + $0x10] sm:$0xff] }
  0xbb   : > { %v733_v15 = vpop.f32.mrf.mxu3  ;;  %v704_v18 = vpop.f32.mrf.mxu2 }
  0xbc   : > { %v624_v16 = vpop.f32.mrf.mxu0  ;;  %v665_v17 = vpop.f32.mrf.mxu1  ;;  %v734_v41 = vadd.f32 %v733_v15, %v704_v18 }
  0xbd   : > { %v666_v19 = vadd.f32 %v665_v17, %v624_v16  ;;  %v1187_v17 = vld [vmem:[%s3687_s7 + $0x40] sm:$0xff] }
  0xbe   : > { %1316 = vmatpush.msrb.mxu1 %v1187_v17  ;;  %v2201_v17 = vld [vmem:[%s3687_s7 + $0xf8] sm:$0xff] }
  0xc3   : > { %v736_v20 = vpop.f32.mrf.mxu3  ;;  %v707_v23 = vpop.f32.mrf.mxu2 }
  0xc4   : > { %v627_v21 = vpop.f32.mrf.mxu0  ;;  %v668_v22 = vpop.f32.mrf.mxu1  ;;  %v737_v1 = vadd.f32 %v736_v20, %v707_v23 }
  0xc5   : > { %v669_v62 = vadd.f32 %v668_v22, %v627_v21 }
  0xcb   : > { %v739_v24 = vpop.f32.mrf.mxu3  ;;  %v710_v27 = vpop.f32.mrf.mxu2 }
  0xcc   : > { %v630_v25 = vpop.f32.mrf.mxu0  ;;  %v671_v26 = vpop.f32.mrf.mxu1  ;;  %v740_v63 = vadd.f32 %v739_v24, %v710_v27  ;;  %v1186_v24 = vld [vmem:[%s3687_s7 + $0x38] sm:$0xff] }
  0xcd   : > { %v672_v0 = vadd.f32 %v671_v26, %v630_v25  ;;  %v2171_v25 = vld [vmem:[%s3687_s7 + $0xa8] sm:$0xf]  ;;  %1317 = vmatpush.msrb.mxu1 %v1186_v24  ;;  %v2164_v24 = vld [vmem:[%s3687_s7 + $0x70] sm:$0xff] }
  0xce   : > { %2172 = vmatpush.msk.msrb.mxu0 %vm1102_vm1, %v2171_v25  ;;  %v2199_v25 = vld [vmem:[%s3687_s7 + $0xe8] sm:$0xff] }
  0xd3   : > { %v742_v28 = vpop.f32.mrf.mxu3  ;;  %v713_v31 = vpop.f32.mrf.mxu2 }
  0xd4   : > { %v791_v29 = vpop.f32.mrf.mxu0  ;;  %v837_v30 = vpop.f32.mrf.mxu1  ;;  %v743_v13 = vadd.f32 %v742_v28, %v713_v31 }
  0xd5   : > { %v803_v43 = vadd.f32 %v791_v29, %v663_v14  ;;  %v849_v44 = vadd.f32 %v837_v30, %v734_v41  ;;  %v1185_v29 = vld [vmem:[%s3687_s7 + $0x30] sm:$0xff]  ;;  %v2170_v30 = vld [vmem:[%s3687_s7 + $0xa0] sm:$0xff] }
  0xd6   : > { %1289 = vmatpush.msrb.mxu0 %v2170_v30  ;;  %1318 = vmatpush.msrb.mxu1 %v1185_v29  ;;  %v1183_v41 = vld [vmem:[%s3687_s7 + $0x20] sm:$0xff] }
  0xd7   : > { %v2188_v29 = vld [vmem:[%s3686_s6 + $0x100] sm:$0xf] }
  0xd8   : > { %v2198_v30 = vld [vmem:[%s3687_s7 + $0xe0] sm:$0xff] }
  0xdb   : > { %v945_v34 = vpop.f32.mrf.mxu3  ;;  %v899_v37 = vpop.f32.mrf.mxu2 }
  0xdc   : > { %v794_v32 = vpop.f32.mrf.mxu0  ;;  %v840_v33 = vpop.f32.mrf.mxu1  ;;  %v911_v46 = vadd.f32 %v899_v37, %v803_v43  ;;  %v957_v47 = vadd.f32 %v945_v34, %v849_v44  ;;  %v2169_v37 = vld [vmem:[%s3687_s7 + $0x98] sm:$0xff] }
  0xdd   : > { %v804_v8 = vadd.f32 %v794_v32, %v666_v19  ;;  %v850_v9 = vadd.f32 %v840_v33, %v737_v1  ;;  %1290 = vmatpush.msrb.mxu0 %v2169_v37  ;;  %v1174_v1 = vld [vmem:[%s3686_s6 + $0x30] sm:$0xff] }
  0xde   : > { %v2186_v37 = vld [vmem:[%s3686_s6 + $0xf0] sm:$0xff] }
  0xe3   : > { %v948_v38 = vpop.f32.mrf.mxu3  ;;  %v902_v42 = vpop.f32.mrf.mxu2 }
  0xe4   : > { %v797_v35 = vpop.f32.mrf.mxu0  ;;  %v843_v36 = vpop.f32.mrf.mxu1  ;;  %v912_v18 = vadd.f32 %v902_v42, %v804_v8  ;;  %v958_v20 = vadd.f32 %v948_v38, %v850_v9  ;;  %v2168_v42 = vld [vmem:[%s3687_s7 + $0x90] sm:$0xff]  ;;  %v1169_v8 = vld [vmem:[%s3686_s6 + $0x8] sm:$0xff]  ;;  %v2148_v9 = vld [vmem:[%s3686_s6 + $0x78] sm:$0xff] }
  0xe5   : > { %v805_v4 = vadd.f32 %v797_v35, %v669_v62  ;;  %v851_v5 = vadd.f32 %v843_v36, %v740_v63  ;;  %v1184_v36 = vld [vmem:[%s3687_s7 + $0x28] sm:$0xff]  ;;  %1291 = vmatpush.msrb.mxu0 %v2168_v42  ;;  %v2151_v62 = vld [vmem:[%s3686_s6 + $0x90] sm:$0xff] }
  0xe6   : > { %1319 = vmatpush.msrb.mxu1 %v1184_v36  ;;  %v1094_v63 = vld [vmem:[%s3684_s4 + $0x8] sm:$0x3f]  ;;  %v2161_v36 = vld [vmem:[%s3687_s7 + $0x58] sm:$0xff] }
  0xe7   : > { %v2195_v42 = vld [vmem:[%s3687_s7 + $0xc8] sm:$0xff] }
  0xe8   : > { %1320 = vmatpush.msrb.mxu1 %v1183_v41  ;;  %v2185_v41 = vld [vmem:[%s3686_s6 + $0xe8] sm:$0xff] }
  0xeb   : > { %v951_v45 = vpop.f32.mrf.mxu3  ;;  %v905_v57 = vpop.f32.mrf.mxu2 }
  0xec   : > { %v800_v39 = vpop.f32.mrf.mxu0  ;;  %v846_v40 = vpop.f32.mrf.mxu1  ;;  %v913_v14 = vadd.f32 %v905_v57, %v805_v4  ;;  %v959_v15 = vadd.f32 %v951_v45, %v851_v5  ;;  %v1177_v57 = vld [vmem:[%s3686_s6 + $0x48] sm:$0xff]  ;;  %v2149_v4 = vld [vmem:[%s3686_s6 + $0x80] sm:$0xff] }
  0xed   : > { %v806_v6 = vadd.f32 %v800_v39, %v672_v0  ;;  %v852_v19 = vadd.f32 %v846_v40, %v743_v13  ;;  %v1130_v0 = vld [vmem:[%s3685_s5 + $0x8] sm:$0x3f]  ;;  %v1172_v5 = vld [vmem:[%s3686_s6 + $0x20] sm:$0xff] }
  0xee   : > { %v2202_v13 = vld [vmem:[%s3687_s7 + $0x100] sm:$0xf] }
  0xf3   : > { %v954_v58 = vpop.f32.mrf.mxu3  ;;  %v908_v2 = vpop.f32.mrf.mxu2 }
  0xf4   : > { %v1007_v49 = vpop.f32.mrf.mxu0  ;;  %v1053_v50 = vpop.f32.mrf.mxu1  ;;  %v914_v16 = vadd.f32 %v908_v2, %v806_v6  ;;  %v960_v26 = vadd.f32 %v954_v58, %v852_v19  ;;  %v2153_v58 = vld [vmem:[%s3686_s6 + $0xa0] sm:$0xff]  ;;  %v2150_v2 = vld [vmem:[%s3686_s6 + $0x88] sm:$0xff]  ;;  %v1171_v6 = vld [vmem:[%s3686_s6 + $0x18] sm:$0xff] }
  0xf5   : > { %v1019_v51 = vadd.f32 %v1007_v49, %v911_v46  ;;  %v1065_v52 = vadd.f32 %v1053_v50, %v957_v47  ;;  %v1182_v47 = vld [vmem:[%s3687_s7 + $0x18] sm:$0xff]  ;;  %v1179_v19 = vld [vmem:[%s3687_s7] sm:$0xff] }
  0xf6   : > { %1321 = vmatpush.msrb.mxu1 %v1182_v47  ;;  %v2214_v47 = vld [vmem:[%s3686_s6 + $0x148] sm:$0xff] }
  0xf7   : > { %v1073_v53 = vadd.f32 %v3007_v48, %v1019_v51  ;;  %v1081_v54 = vadd.f32 %v3007_v48, %v1065_v52 }
  0xf8   : > { %1322 = vmatpush.msrb.mxu1 %v1181_v12 }
  0xf9   : > { %v1077_v55 = vmax.f32 %v1073_v53, 0.0  ;;  %v1085_v56 = vmax.f32 %v1081_v54, 0.0  ;;  %v1093_v53 = vld [vmem:[%s3684_s4] sm:$0xff] }
  0xfa   : > { %v1129_v54 = vld [vmem:[%s3685_s5] sm:$0xff] }
  0xfb   : > { %v3011_v59 = vmax.f32 %v1077_v55, %v1085_v56  ;;  %v1016_v10 = vpop.f32.mrf.mxu3  ;;  %v1178_v55 = vld [vmem:[%s3686_s6 + $0x50] sm:$0xf]  ;;  %v2154_v56 = vld [vmem:[%s3686_s6 + $0xa8] sm:$0xf] }
  0xfc   : > { %v1010_v60 = vpop.f32.mrf.mxu0  ;;  %v1056_v61 = vpop.f32.mrf.mxu1  ;;  %v1022_v21 = vadd.f32 %v1016_v10, %v914_v16  ;;  %v1168_v10 = vld [vmem:[%s3686_s6] sm:$0xff]  ;;  %v1180_v16 = vld [vmem:[%s3687_s7 + $0x8] sm:$0xff] }
  0xfd   : > { %v1020_v27 = vadd.f32 %v1010_v60, %v912_v18  ;;  %v1066_v28 = vadd.f32 %v1056_v61, %v958_v20  ;;  %v2152_v60 = vld [vmem:[%s3686_s6 + $0x98] sm:$0xff]  ;;  %1323 = vmatpush.msrb.mxu1 %v1180_v16  ;;  %v2146_v18 = vld [vmem:[%s3686_s6 + $0x68] sm:$0xff]  ;;  %v2244_v16 = vld [vmem:[%s3686_s6 + $0x1b0] sm:$0xf] }
  0xfe   : > { %v1076_v32 = vadd.f32 %v3007_v48, %v1022_v21  ;;  %v1175_v61 = vld [vmem:[%s3686_s6 + $0x38] sm:$0xff]  ;;  %v2200_v21 = vld [vmem:[%s3687_s7 + $0xf0] sm:$0xff] }
  0xff   : > { %v1074_v38 = vadd.f32 %v3007_v48, %v1020_v27  ;;  %v1082_v39 = vadd.f32 %v3007_v48, %v1066_v28  ;;  %v2165_v20 = vld [vmem:[%s3687_s7 + $0x78] sm:$0xff]  ;;  %1324 = vmatpush.msrb.mxu1 %v1179_v19  ;;  %v2229_v27 = vld [vmem:[%s3687_s7 + $0x150] sm:$0xff]  ;;  %v2163_v28 = vld [vmem:[%s3687_s7 + $0x68] sm:$0xff] }
 0x100   : > { %v1080_v43 = vmax.f32 %v1076_v32, 0.0  ;;  %v2162_v32 = vld [vmem:[%s3687_s7 + $0x60] sm:$0xff]  ;;  %v2243_v19 = vld [vmem:[%s3686_s6 + $0x1a8] sm:$0xff] }
 0x101   : > { %v1086_v49 = vmax.f32 %v1082_v39, 0.0  ;;  %v2216_v39 = vld [vmem:[%s3686_s6 + $0x158] sm:$0xf] }
 0x104   : > { %v1059_v3 = vpop.f32.mrf.mxu1  ;;  %v1013_v11 = vpop.f32.mrf.mxu0 }
 0x105   : > { %v1021_v22 = vadd.f32 %v1013_v11, %v913_v14  ;;  %v1067_v23 = vadd.f32 %v1059_v3, %v959_v15  ;;  %v1173_v3 = vld [vmem:[%s3686_s6 + $0x28] sm:$0xff]  ;;  %v2147_v14 = vld [vmem:[%s3686_s6 + $0x70] sm:$0xff]  ;;  %v2166_v15 = vld [vmem:[%s3687_s7 + $0x80] sm:$0xff] }
 0x106   : > { %v2167_v11 = vld [vmem:[%s3687_s7 + $0x88] sm:$0xff] }
 0x107   : > { %v1075_v33 = vadd.f32 %v3007_v48, %v1021_v22  ;;  %v1083_v34 = vadd.f32 %v3007_v48, %v1067_v23  ;;  %1292 = vmatpush.msrb.mxu0 %v2167_v11  ;;  %v2145_v22 = vld [vmem:[%s3686_s6 + $0x60] sm:$0xff]  ;;  %v2230_v23 = vld [vmem:[%s3687_s7 + $0x158] sm:$0xf]  ;;  %v2258_v11 = vld [vmem:[%s3687_s7 + $0x1b0] sm:$0xf] }
 0x108   : > { %2231 = vmatpush.msk.msra.mxu1 %vm1102_vm1, %v2230_v23  ;;  %v2252_v23 = vld [vmem:[%s3687_s7 + $0x180] sm:$0xff] }
 0x109   : > { %v1079_v44 = vmax.f32 %v1075_v33, 0.0  ;;  %v1087_v45 = vmax.f32 %v1083_v34, 0.0  ;;  %1293 = vmatpush.msrb.mxu0 %v2166_v15  ;;  %v2187_v33 = vld [vmem:[%s3686_s6 + $0xf8] sm:$0xff] }
 0x10a   : > { %1489 = vmatpush.msra.mxu1 %v2229_v27  ;;  %v2197_v34 = vld [vmem:[%s3687_s7 + $0xd8] sm:$0xff] }
 0x10b   : > { %v1091_v51 = vmax.f32 %v1079_v44, %v1087_v45  ;;  %1294 = vmatpush.msrb.mxu0 %v2165_v20  ;;  %v2225_v44 = vld [vmem:[%s3687_s7 + $0x130] sm:$0xff]  ;;  %v2184_v45 = vld [vmem:[%s3686_s6 + $0xe0] sm:$0xff]  ;;  %v2255_v15 = vld [vmem:[%s3687_s7 + $0x198] sm:$0xff] }
 0x10c   : > { %v1062_v31 = vpop.f32.mrf.mxu1  ;;  %v2254_v20 = vld [vmem:[%s3687_s7 + $0x190] sm:$0xff]  ;;  %v2251_v27 = vld [vmem:[%s3687_s7 + $0x178] sm:$0xff] }
 0x10d   : > { %v1068_v35 = vadd.f32 %v1062_v31, %v960_v26  ;;  %1295 = vmatpush.msrb.mxu0 %v2164_v24  ;;  %v2144_v26 = vld [vmem:[%s3686_s6 + $0x58] sm:$0xff]  ;;  %v2228_v31 = vld [vmem:[%s3687_s7 + $0x148] sm:$0xff] }
 0x10e   : > { %1490 = vmatpush.msra.mxu1 %v2228_v31  ;;  %v2241_v24 = vld [vmem:[%s3686_s6 + $0x198] sm:$0xff]  ;;  %v2239_v31 = vld [vmem:[%s3686_s6 + $0x188] sm:$0xff] }
 0x10f   : > { %v1084_v40 = vadd.f32 %v3007_v48, %v1068_v35  ;;  %v1078_v48 = vmax.f32 %v1074_v38, 0.0  ;;  %1296 = vmatpush.msrb.mxu0 %v2163_v28  ;;  %v2227_v35 = vld [vmem:[%s3687_s7 + $0x140] sm:$0xff]  ;;  %v2196_v38 = vld [vmem:[%s3687_s7 + $0xd0] sm:$0xff] }
 0x110   : > { %1491 = vmatpush.msra.mxu1 %v2227_v35  ;;  %v2248_v35 = vld [vmem:[%s3687_s7 + $0x160] sm:$0xff] }
 0x111   : > { %v1088_v46 = vmax.f32 %v1084_v40, 0.0  ;;  %v1090_v52 = vmax.f32 %v1078_v48, %v1086_v49  ;;  %1297 = vmatpush.msrb.mxu0 %v2162_v32  ;;  %v2226_v40 = vld [vmem:[%s3687_s7 + $0x138] sm:$0xff]  ;;  %v2224_v48 = vld [vmem:[%s3687_s7 + $0x128] sm:$0xff] }
 0x112   : > { %1492 = vmatpush.msra.mxu1 %v2226_v40  ;;  %v2183_v49 = vld [vmem:[%s3686_s6 + $0xd8] sm:$0xff]  ;;  %v2249_v32 = vld [vmem:[%s3687_s7 + $0x168] sm:$0xff] }
 0x113   : > { %v1092_v50 = vmax.f32 %v1080_v43, %v1088_v46  ;;  %1298 = vmatpush.msrb.mxu0 %v2161_v36  ;;  %v2215_v43 = vld [vmem:[%s3686_s6 + $0x150] sm:$0xff]  ;;  %v2194_v46 = vld [vmem:[%s3687_s7 + $0xc0] sm:$0xff] }
 0x114   : > { %1493 = vmatpush.msra.mxu1 %v2225_v44 }
 0x115   : > { %2138 = vmatpush.msk.msra.mxu2 %vm1102_vm1, %v1092_v50  ;;  %2141 = vmatpush.msk.msrb.mxu3 %vm1102_vm1, %v1092_v50  ;;  %v2193_v50 = vld [vmem:[%s3687_s7 + $0xb8] sm:$0xff] }
 0x116   : > { %2217 = vmatpush.msk.msra.mxu0 %vm1102_vm1, %v2216_v39  ;;  %1494 = vmatpush.msra.mxu1 %v2224_v48  ;;  %v2235_v39 = vld [vmem:[%s3686_s6 + $0x168] sm:$0xff] }
 0x117   : > { %1119 = vmatpush.msra.mxu2 %v1091_v51  ;;  %1150 = vmatpush.msrb.mxu3 %v1091_v51  ;;  %v2213_v51 = vld [vmem:[%s3686_s6 + $0x140] sm:$0xff] }
 0x118   : > { %1449 = vmatpush.msra.mxu0 %v2215_v43 }
 0x119   : > { %1120 = vmatpush.msra.mxu2 %v1090_v52  ;;  %1151 = vmatpush.msrb.mxu3 %v1090_v52  ;;  %v2223_v52 = vld [vmem:[%s3687_s7 + $0x120] sm:$0xff] }
 0x11a   : > { %1450 = vmatpush.msra.mxu0 %v2214_v47  ;;  %1495 = vmatpush.msra.mxu1 %v2223_v52 }
 0x11b   : > { %1121 = vmatpush.msra.mxu2 %v3011_v59  ;;  %1152 = vmatpush.msrb.mxu3 %v3011_v59  ;;  %v1176_v59 = vld [vmem:[%s3686_s6 + $0x40] sm:$0xff] }
 0x11c   : > { %2139 = vmatmul.msk.f32.vlgmr.msra.gmra.mxu2 %vm1095_vm2, %v1093_v53  ;;  %2142 = vmatmul.msk.f32.vlgmr.msrb.gmra.mxu3 %vm1095_vm2, %v1129_v54  ;;  %v2182_v53 = vld [vmem:[%s3686_s6 + $0xd0] sm:$0xff] }
 0x11d   : > { %2158 = vmatpush.msk.msra.mxu3 %vm1102_vm1, %v1178_v55  ;;  %2155 = vmatpush.msk.msrb.mxu2 %vm1102_vm1, %v2154_v56  ;;  %v2192_v54 = vld [vmem:[%s3687_s7 + $0xb0] sm:$0xff]  ;;  %v2212_v55 = vld [vmem:[%s3686_s6 + $0x138] sm:$0xff] }
 0x11e   : > { %v2222_v56 = vld [vmem:[%s3687_s7 + $0x118] sm:$0xff]  ;;  %1451 = vmatpush.msra.mxu0 %v2213_v51 }
 0x11f   : > { %1251 = vmatpush.msra.mxu3 %v1177_v57  ;;  %1219 = vmatpush.msrb.mxu2 %v2153_v58  ;;  %v2181_v57 = vld [vmem:[%s3686_s6 + $0xc8] sm:$0xff]  ;;  %v2211_v58 = vld [vmem:[%s3686_s6 + $0x130] sm:$0xff] }
 0x120   : > { %1452 = vmatpush.msra.mxu0 %v2212_v55  ;;  %1496 = vmatpush.msra.mxu1 %v2222_v56  ;;  %v2274_v55 = vld [vmem:[%s3691_s11 + $0x90] sm:$0xff]  ;;  %v2273_v56 = vld [vmem:[%s3691_s11 + $0x88] sm:$0xff] }
 0x121   : > { %1252 = vmatpush.msra.mxu3 %v1176_v59  ;;  %1220 = vmatpush.msrb.mxu2 %v2152_v60  ;;  %v2221_v59 = vld [vmem:[%s3687_s7 + $0x110] sm:$0xff]  ;;  %v2180_v60 = vld [vmem:[%s3686_s6 + $0xc0] sm:$0xff] }
 0x122   : > { %1453 = vmatpush.msra.mxu0 %v2211_v58  ;;  %1497 = vmatpush.msra.mxu1 %v2221_v59 }
 0x123   : > { %1253 = vmatpush.msra.mxu3 %v1175_v61  ;;  %1221 = vmatpush.msrb.mxu2 %v2151_v62  ;;  %v2210_v61 = vld [vmem:[%s3686_s6 + $0x128] sm:$0xff] }
 0x124   : > { %2140 = vmatmul.msk.f32.gmra.mxu2 %vm1095_vm2, %v1094_v63  ;;  %2143 = vmatmul.msk.f32.gmra.mxu3 %vm1095_vm2, %v1130_v0  ;;  %v2220_v62 = vld [vmem:[%s3687_s7 + $0x108] sm:$0xff]  ;;  %v2179_v63 = vld [vmem:[%s3686_s6 + $0xb8] sm:$0xff]  ;;  %v2209_v0 = vld [vmem:[%s3686_s6 + $0x120] sm:$0xff] }
 0x125   : > { %1254 = vmatpush.msra.mxu3 %v1174_v1  ;;  %1222 = vmatpush.msrb.mxu2 %v2150_v2  ;;  %v2178_v1 = vld [vmem:[%s3686_s6 + $0xb0] sm:$0xff]  ;;  %v2208_v2 = vld [vmem:[%s3686_s6 + $0x118] sm:$0xff] }
 0x126   : > { %1454 = vmatpush.msra.mxu0 %v2210_v61  ;;  %1498 = vmatpush.msra.mxu1 %v2220_v62  ;;  %v2271_v61 = vld [vmem:[%s3691_s11 + $0x78] sm:$0xff] }
 0x127   : > { %1255 = vmatpush.msra.mxu3 %v1173_v3  ;;  %1223 = vmatpush.msrb.mxu2 %v2149_v4  ;;  %v2207_v3 = vld [vmem:[%s3686_s6 + $0x110] sm:$0xff] }
 0x128   : > { %1455 = vmatpush.msra.mxu0 %v2209_v0 }
 0x129   : > { %1256 = vmatpush.msra.mxu3 %v1172_v5  ;;  %1224 = vmatpush.msrb.mxu2 %v2148_v9 }
 0x12a   : > { %1456 = vmatpush.msra.mxu0 %v2208_v2  ;;  %v2269_v2 = vld [vmem:[%s3691_s11 + $0x68] sm:$0xff] }
 0x12b   : > { %1257 = vmatpush.msra.mxu3 %v1171_v6  ;;  %1225 = vmatpush.msrb.mxu2 %v2147_v14  ;;  %v2256_v14 = vld [vmem:[%s3687_s7 + $0x1a0] sm:$0xff] }
 0x12c   : > { %1457 = vmatpush.msra.mxu0 %v2207_v3 }
 0x12d   : > { %1258 = vmatpush.msra.mxu3 %v1170_v7  ;;  %1226 = vmatpush.msrb.mxu2 %v2146_v18  ;;  %v2206_v7 = vld [vmem:[%s3686_s6 + $0x108] sm:$0xff] }
 0x12e   : > { %1458 = vmatpush.msra.mxu0 %v2206_v7  ;;  %v2268_v7 = vld [vmem:[%s3691_s11 + $0x60] sm:$0xff] }
 0x12f   : > { %1259 = vmatpush.msra.mxu3 %v1169_v8  ;;  %1227 = vmatpush.msrb.mxu2 %v2145_v22  ;;  %v2242_v22 = vld [vmem:[%s3686_s6 + $0x1a0] sm:$0xff] }
 0x131   : > { %1260 = vmatpush.msra.mxu3 %v1168_v10  ;;  %1228 = vmatpush.msrb.mxu2 %v2144_v26 }
 0x133   : > { %2203 = vmatpush.msk.msrb.mxu3 %vm1102_vm1, %v2202_v13  ;;  %2189 = vmatpush.msk.msra.mxu2 %vm1102_vm1, %v2188_v29  ;;  %v2257_v13 = vld [vmem:[%s3687_s7 + $0x1a8] sm:$0xff]  ;;  %v2240_v29 = vld [vmem:[%s3686_s6 + $0x190] sm:$0xff] }
 0x135   : > { %1401 = vmatpush.msrb.mxu3 %v2201_v17  ;;  %1361 = vmatpush.msra.mxu2 %v2187_v33 }
 0x137   : > { %1402 = vmatpush.msrb.mxu3 %v2200_v21  ;;  %1362 = vmatpush.msra.mxu2 %v2186_v37  ;;  %v2253_v21 = vld [vmem:[%s3687_s7 + $0x188] sm:$0xff]  ;;  %v2237_v37 = vld [vmem:[%s3686_s6 + $0x178] sm:$0xff] }
 0x139   : > { %1403 = vmatpush.msrb.mxu3 %v2199_v25  ;;  %1363 = vmatpush.msra.mxu2 %v2185_v41  ;;  %v2234_v41 = vld [vmem:[%s3686_s6 + $0x160] sm:$0xff] }
 0x13b   : > { %1404 = vmatpush.msrb.mxu3 %v2198_v30  ;;  %1364 = vmatpush.msra.mxu2 %v2184_v45  ;;  %v2250_v30 = vld [vmem:[%s3687_s7 + $0x170] sm:$0xff] }
 0x13d   : > { %1405 = vmatpush.msrb.mxu3 %v2197_v34  ;;  %1365 = vmatpush.msra.mxu2 %v2183_v49  ;;  %v2238_v34 = vld [vmem:[%s3686_s6 + $0x180] sm:$0xff] }
 0x13f   : > { %1406 = vmatpush.msrb.mxu3 %v2196_v38  ;;  %1366 = vmatpush.msra.mxu2 %v2182_v53  ;;  %v2236_v38 = vld [vmem:[%s3686_s6 + $0x170] sm:$0xff] }
 0x141   : > { %1407 = vmatpush.msrb.mxu3 %v2195_v42  ;;  %1367 = vmatpush.msra.mxu2 %v2181_v57 }
 0x143   : > { %1408 = vmatpush.msrb.mxu3 %v2194_v46  ;;  %1368 = vmatpush.msra.mxu2 %v2180_v60  ;;  %v2272_v60 = vld [vmem:[%s3691_s11 + $0x80] sm:$0xff] }
 0x145   : > { %1409 = vmatpush.msrb.mxu3 %v2193_v50  ;;  %1369 = vmatpush.msra.mxu2 %v2179_v63  ;;  %v2270_v63 = vld [vmem:[%s3691_s11 + $0x70] sm:$0xff] }
 0x147   : > { %1410 = vmatpush.msrb.mxu3 %v2192_v54  ;;  %1370 = vmatpush.msra.mxu2 %v2178_v1  ;;  %v2275_v54 = vld [vmem:[%s3691_s11 + $0x98] sm:$0xff] }
 0x19f   : > { %v1123_v4 = vpop.f32.mrf.mxu2  ;;  %v1154_v5 = vpop.f32.mrf.mxu3 }
 0x1a0   : > { %v1160_v6 = vmax.f32 %v1123_v4, %v1154_v5 }
 0x1a2   : > { %1163 = vst.msk [vmem:[#allocation2] sm:$0xff] %vm1162_vm3, %v1160_v6 }
 0x1a7   : > { %v1126_v8 = vpop.f32.mrf.mxu2  ;;  %v1157_v9 = vpop.f32.mrf.mxu3 }
 0x1a8   : > { %v1161_v10 = vmax.f32 %v1126_v8, %v1157_v9 }
 0x1a9   : > { %v1166_v12 = vld [vmem:[#allocation2] sm:$0xff] }
 0x1aa   : > { %1165 = vst.msk [vmem:[#allocation2 + $0x8] sm:$0x3f] %vm1164_vm4, %v1161_v10  ;;  %2159 = vmatmul.msk.f32.vlgmr.msra.gmra.mxu3 %vm1162_vm3, %v1166_v12  ;;  %2176 = vmatmul.msk.f32.vlgmr.msrb.gmra.mxu1 %vm1162_vm3, %v1166_v12  ;;  %v2267_v12 = vld [vmem:[%s3691_s11 + $0x58] sm:$0xff] }
 0x1ab   : > { %2259 = vmatpush.msk.msra.mxu3 %vm1102_vm1, %v2258_v11 }
 0x1ad   : > { %1577 = vmatpush.msra.mxu3 %v2257_v13 }
 0x1af   : > { %1578 = vmatpush.msra.mxu3 %v2256_v14 }
 0x1b1   : > { %v1190_v17 = vld [vmem:[#allocation2 + $0x1] sm:$0xff]  ;;  %1579 = vmatpush.msra.mxu3 %v2255_v15  ;;  %v1191_v25 = vld [vmem:[#allocation2 + $0x9] sm:$0x3]  ;;  %v1421_v36 = vld [vmem:[#allocation2 + $0xb] sm:$0x3] }
 0x1b2   : > { %v1167_v18 = vld [vmem:[#allocation2 + $0x8] sm:$0x3]  ;;  %2156 = vmatmul.msk.f32.vlgmr.msrb.gmra.mxu2 %vm1162_vm3, %v1190_v17  ;;  %2173 = vmatmul.msk.f32.vlgmr.msrb.gmra.mxu0 %vm1162_vm3, %v1190_v17  ;;  %v1333_v33 = vld [vmem:[#allocation2 + $0xa] sm:$0x3]  ;;  %v1509_v42 = vld [vmem:[#allocation2 + $0xc] sm:$0x3] }
 0x1b3   : > { %2160 = vmatmul.msk.f32.gmra.mxu3 %vm1162_vm3, %v1167_v18  ;;  %2177 = vmatmul.msk.f32.gmra.mxu1 %vm1162_vm3, %v1167_v18  ;;  %v1332_v26 = vld [vmem:[#allocation2 + $0x2] sm:$0xff] }
 0x1b4   : > { %2245 = vmatpush.msk.msrb.mxu2 %vm1102_vm1, %v2244_v16  ;;  %1580 = vmatpush.msra.mxu3 %v2254_v20  ;;  %v1420_v28 = vld [vmem:[#allocation2 + $0x3] sm:$0xff]  ;;  %v2266_v16 = vld [vmem:[%s3691_s11 + $0x50] sm:$0xff] }
 0x1b5   : > { %v1508_v40 = vld [vmem:[#allocation2 + $0x4] sm:$0xff] }
 0x1b6   : > { %1537 = vmatpush.msrb.mxu2 %v2243_v19  ;;  %1581 = vmatpush.msra.mxu3 %v2253_v21 }
 0x1b8   : > { %1538 = vmatpush.msrb.mxu2 %v2242_v22  ;;  %1582 = vmatpush.msra.mxu3 %v2252_v23  ;;  %v2369_v22 = vld [vmem:[%s3688_s8] ss:$0 sm:$0xff] }
 0x1ba   : > { %2157 = vmatmul.msk.f32.gmra.mxu2 %vm1162_vm3, %v1191_v25  ;;  %2174 = vmatmul.msk.f32.gmra.mxu0 %vm1162_vm3, %v1191_v25 }
 0x1bb   : > { %2204 = vmatmul.msk.f32.vlgmr.msrb.gmra.mxu3 %vm1162_vm3, %v1332_v26  ;;  %2232 = vmatmul.msk.f32.vlgmr.msra.gmra.mxu1 %vm1162_vm3, %v1420_v28 }
 0x1bc   : > { %1539 = vmatpush.msrb.mxu2 %v2241_v24  ;;  %1583 = vmatpush.msra.mxu3 %v2251_v27 }
 0x1be   : > { %1540 = vmatpush.msrb.mxu2 %v2240_v29  ;;  %1584 = vmatpush.msra.mxu3 %v2250_v30 }
 0x1c0   : > { %1541 = vmatpush.msrb.mxu2 %v2239_v31  ;;  %1585 = vmatpush.msra.mxu3 %v2249_v32 }
 0x1c2   : > { %2190 = vmatmul.msk.f32.vlgmr.msra.gmra.mxu2 %vm1162_vm3, %v1332_v26  ;;  %2218 = vmatmul.msk.f32.vlgmr.msra.gmra.mxu0 %vm1162_vm3, %v1420_v28 }
 0x1c3   : > { %2205 = vmatmul.msk.f32.gmra.mxu3 %vm1162_vm3, %v1333_v33  ;;  %2233 = vmatmul.msk.f32.gmra.mxu1 %vm1162_vm3, %v1421_v36 }
 0x1c4   : > { %1542 = vmatpush.msrb.mxu2 %v2238_v34  ;;  %1586 = vmatpush.msra.mxu3 %v2248_v35 }
 0x1c6   : > { %1543 = vmatpush.msrb.mxu2 %v2237_v37  ;;  %v1639_v37 = vld [vmem:[%s3690_s10] sm:$0x1f] }
 0x1c8   : > { %1544 = vmatpush.msrb.mxu2 %v2236_v38  ;;  %v1676_v38 = vld [vmem:[%s3691_s11 + $0x48] sm:$0xff] }
 0x1ca   : > { %2191 = vmatmul.msk.f32.gmra.mxu2 %vm1162_vm3, %v1333_v33  ;;  %2219 = vmatmul.msk.f32.gmra.mxu0 %vm1162_vm3, %v1421_v36  ;;  %v1610_v36 = vld [vmem:[%s3689_s9] sm:$0x1f] }
 0x1cb   : > { %2260 = vmatmul.msk.f32.vlgmr.msra.gmra.mxu3 %vm1162_vm3, %v1508_v40  ;;  %1545 = vmatpush.msrb.mxu2 %v2235_v39  ;;  %v1675_v39 = vld [vmem:[%s3691_s11 + $0x40] sm:$0xff] }
 0x1cd   : > { %1546 = vmatpush.msrb.mxu2 %v2234_v41  ;;  %v1673_v41 = vld [vmem:[%s3691_s11 + $0x30] sm:$0xff] }
 0x1cf   : > { %1699 = vmatpush.msra.mxu2 %v2275_v54  ;;  %v2283_v54 = vld [vmem:[%s3691_s11 + $0xc8] sm:$0xff] }
 0x1d1   : > { %1700 = vmatpush.msra.mxu2 %v2274_v55  ;;  %v2308_v55 = vld [vmem:[%s3691_s11 + $0x180] sm:$0xff] }
 0x1d2   : > { %2246 = vmatmul.msk.f32.vlgmr.msrb.gmra.mxu2 %vm1162_vm3, %v1508_v40  ;;  %v1674_v40 = vld [vmem:[%s3691_s11 + $0x38] sm:$0xff] }
 0x1d3   : > { %2261 = vmatmul.msk.f32.gmra.mxu3 %vm1162_vm3, %v1509_v42  ;;  %1701 = vmatpush.msra.mxu2 %v2273_v56  ;;  %v2307_v56 = vld [vmem:[%s3691_s11 + $0x178] sm:$0xff] }
 0x1d5   : > { %1702 = vmatpush.msra.mxu2 %v2272_v60  ;;  %v2295_v60 = vld [vmem:[%s3691_s11 + $0x120] sm:$0xff] }
 0x1d7   : > { %1703 = vmatpush.msra.mxu2 %v2271_v61  ;;  %v2282_v61 = vld [vmem:[%s3691_s11 + $0xc0] sm:$0xff] }
 0x1d9   : > { %1704 = vmatpush.msra.mxu2 %v2270_v63  ;;  %v2305_v63 = vld [vmem:[%s3691_s11 + $0x168] sm:$0xff] }
 0x1da   : > { %2247 = vmatmul.msk.f32.gmra.mxu2 %vm1162_vm3, %v1509_v42  ;;  %v1672_v42 = vld [vmem:[%s3691_s11 + $0x28] sm:$0xff] }
 0x1db   : > { %1705 = vmatpush.msra.mxu2 %v2269_v2  ;;  %v2294_v2 = vld [vmem:[%s3691_s11 + $0x118] sm:$0xff] }
 0x1dd   : > { %1706 = vmatpush.msra.mxu2 %v2268_v7  ;;  %v2302_v7 = vld [vmem:[%s3691_s11 + $0x150] sm:$0xff] }
 0x1df   : > { %1707 = vmatpush.msra.mxu2 %v2267_v12  ;;  %v2290_v12 = vld [vmem:[%s3691_s11 + $0xf8] sm:$0xff] }
 0x1e1   : > { %1708 = vmatpush.msra.mxu2 %v2266_v16  ;;  %v1859_v16 = vld [vmem:[%s3693_s13 + $0x60] sm:$0xff] }
 0x227   : > { %v1326_v46 = vpop.f32.mrf.mxu1 }
 0x22d   : > { %v1262_v43 = vpop.f32.mrf.mxu3 }
 0x22f   : > { %v1300_v47 = vpop.f32.mrf.mxu0 }
 0x230   : > { %v1329_v50 = vpop.f32.mrf.mxu1  ;;  %v1327_v3 = vadd.f32 %v1326_v46, %v1300_v47  ;;  %v2287_v46 = vld [vmem:[%s3691_s11 + $0xe8] sm:$0xff]  ;;  %v2286_v47 = vld [vmem:[%s3691_s11 + $0xe0] sm:$0xff] }
 0x235   : > { %v1230_v44 = vpop.f32.mrf.mxu2 }
 0x236   : > { %v1265_v45 = vpop.f32.mrf.mxu3  ;;  %v1263_v0 = vadd.f32 %v1262_v43, %v1230_v44  ;;  %v1671_v43 = vld [vmem:[%s3691_s11 + $0x20] sm:$0xff]  ;;  %v1670_v44 = vld [vmem:[%s3691_s11 + $0x18] sm:$0xff] }
 0x237   : > { %v1303_v53 = vpop.f32.mrf.mxu0 }
 0x238   : > { %v1500_v57 = vpop.f32.mrf.mxu1  ;;  %v1330_v1 = vadd.f32 %v1329_v50, %v1303_v53  ;;  %v2284_v50 = vld [vmem:[%s3691_s11 + $0xd0] sm:$0xff]  ;;  %v2298_v53 = vld [vmem:[%s3691_s11 + $0x138] sm:$0xff] }
 0x23d   : > { %v1233_v48 = vpop.f32.mrf.mxu2 }
 0x23e   : > { %v1412_v49 = vpop.f32.mrf.mxu3  ;;  %v1266_v8 = vadd.f32 %v1265_v45, %v1233_v48  ;;  %v1669_v45 = vld [vmem:[%s3691_s11 + $0x10] sm:$0xff]  ;;  %v2285_v48 = vld [vmem:[%s3691_s11 + $0xd8] sm:$0xff] }
 0x23f   : > { %v1460_v62 = vpop.f32.mrf.mxu0  ;;  %v1418_v9 = vadd.f32 %v1412_v49, %v1327_v3  ;;  %v1668_v49 = vld [vmem:[%s3691_s11 + $0x8] sm:$0xff] }
 0x240   : > { %v1503_v10 = vpop.f32.mrf.mxu1  ;;  %v2279_v3 = vld [vmem:[%s3691_s11 + $0xa8] sm:$0xff] }
 0x241   : > { %v1506_v17 = vadd.f32 %v1500_v57, %v1418_v9  ;;  %v2297_v57 = vld [vmem:[%s3691_s11 + $0x130] sm:$0xff]  ;;  %v2278_v9 = vld [vmem:[%s3691_s11 + $0xa0] sm:$0xff] }
 0x245   : > { %v1372_v51 = vpop.f32.mrf.mxu2 }
 0x246   : > { %v1415_v52 = vpop.f32.mrf.mxu3  ;;  %v1378_v4 = vadd.f32 %v1372_v51, %v1263_v0  ;;  %v1667_v51 = vld [vmem:[%s3691_s11] sm:$0xff]  ;;  %v2280_v0 = vld [vmem:[%s3691_s11 + $0xb0] sm:$0xff] }
 0x247   : > { %v1419_v5 = vadd.f32 %v1415_v52, %v1330_v1  ;;  %v1463_v19 = vpop.f32.mrf.mxu0  ;;  %v2309_v52 = vld [vmem:[%s3691_s11 + $0x188] sm:$0xff]  ;;  %v2304_v1 = vld [vmem:[%s3691_s11 + $0x160] sm:$0xff] }
 0x248   : > { %v1466_v14 = vadd.f32 %v1460_v62, %v1378_v4  ;;  %1829 = vmatpush.msrb.mxu2 %v2309_v52  ;;  %v2281_v62 = vld [vmem:[%s3691_s11 + $0xb8] sm:$0xff] }
 0x249   : > { %v1507_v15 = vadd.f32 %v1503_v10, %v1419_v5  ;;  %v2303_v4 = vld [vmem:[%s3691_s11 + $0x158] sm:$0xff]  ;;  %v2293_v5 = vld [vmem:[%s3691_s11 + $0x110] sm:$0xff]  ;;  %v2301_v10 = vld [vmem:[%s3691_s11 + $0x148] sm:$0xff] }
 0x24a   : > { %1830 = vmatpush.msrb.mxu2 %v2308_v55 }
 0x24c   : > { %1831 = vmatpush.msrb.mxu2 %v2307_v56 }
 0x24d   : > { %v1375_v58 = vpop.f32.mrf.mxu2 }
 0x24e   : > { %v1588_v59 = vpop.f32.mrf.mxu3  ;;  %v1379_v13 = vadd.f32 %v1375_v58, %v1266_v8  ;;  %v2296_v58 = vld [vmem:[%s3691_s11 + $0x128] sm:$0xff]  ;;  %v2291_v8 = vld [vmem:[%s3691_s11 + $0x100] sm:$0xff] }
 0x24f   : > { %v1594_v21 = vadd.f32 %v1588_v59, %v1506_v17  ;;  %v2306_v59 = vld [vmem:[%s3691_s11 + $0x170] sm:$0xff]  ;;  %v1858_v17 = vld [vmem:[%s3693_s13 + $0x58] sm:$0xff] }
 0x250   : > { %v1467_v23 = vadd.f32 %v1463_v19, %v1379_v13  ;;  %1832 = vmatpush.msrb.mxu2 %v2306_v59  ;;  %v2289_v13 = vld [vmem:[%s3691_s11 + $0xf0] sm:$0xff]  ;;  %v1888_v59 = vld [vmem:[%s3695_s15] sm:$0xff] }
 0x251   : > { %v1604_v28 = vadd.f32 %v2369_v22, %v1594_v21 }
 0x252   : > { %1833 = vmatpush.msrb.mxu2 %v2305_v63 }
 0x253   : > { %v1606_v33 = vmax.f32 %v1604_v28, 0.0  ;;  %v1855_v28 = vld [vmem:[%s3693_s13 + $0x40] sm:$0xff] }
 0x254   : > { %1834 = vmatpush.msrb.mxu2 %v2304_v1 }
 0x255   : > { %v1548_v6 = vpop.f32.mrf.mxu2 }
 0x256   : > { %v1591_v11 = vpop.f32.mrf.mxu3  ;;  %v1554_v18 = vadd.f32 %v1548_v6, %v1466_v14  ;;  %v2292_v6 = vld [vmem:[%s3691_s11 + $0x108] sm:$0xff]  ;;  %1835 = vmatpush.msrb.mxu2 %v2303_v4  ;;  %v1861_v14 = vld [vmem:[%s3693_s13 + $0x70] sm:$0xff] }
 0x257   : > { %v1595_v20 = vadd.f32 %v1591_v11, %v1507_v15  ;;  %v2300_v11 = vld [vmem:[%s3691_s11 + $0x140] sm:$0xff]  ;;  %v1860_v15 = vld [vmem:[%s3693_s13 + $0x68] sm:$0xff]  ;;  %1868 = vmatpush.msrb.mxu3 %v1861_v14 }
 0x258   : > { %v1600_v25 = vadd.f32 %v2369_v22, %v1554_v18  ;;  %1836 = vmatpush.msrb.mxu2 %v2302_v7  ;;  %v1857_v18 = vld [vmem:[%s3693_s13 + $0x50] sm:$0xff] }
 0x259   : > { %v1605_v26 = vadd.f32 %v2369_v22, %v1595_v20  ;;  %1869 = vmatpush.msrb.mxu3 %v1860_v15  ;;  %v1856_v20 = vld [vmem:[%s3693_s13 + $0x48] sm:$0xff] }
 0x25a   : > { %v1602_v30 = vmax.f32 %v1600_v25, 0.0  ;;  %1837 = vmatpush.msrb.mxu2 %v2301_v10 }
 0x25b   : > { %v1607_v31 = vmax.f32 %v1605_v26, 0.0  ;;  %1870 = vmatpush.msrb.mxu3 %v1859_v16 }
 0x25c   : > { %v1608_v35 = vmax.f32 %v1602_v30, %v1606_v33  ;;  %1838 = vmatpush.msrb.mxu2 %v2300_v11  ;;  %v1853_v30 = vld [vmem:[%s3693_s13 + $0x30] sm:$0xff]  ;;  %v1850_v33 = vld [vmem:[%s3693_s13 + $0x18] sm:$0xff] }
 0x25d   : > { %v1551_v24 = vpop.f32.mrf.mxu2  ;;  %1871 = vmatpush.msrb.mxu3 %v1858_v17 }
 0x25e   : > { %v1555_v27 = vadd.f32 %v1551_v24, %v1467_v23 }
 0x25f   : > { %1872 = vmatpush.msrb.mxu3 %v1857_v18 }
 0x260   : > { %v1601_v29 = vadd.f32 %v2369_v22, %v1555_v27 }
 0x261   : > { %1873 = vmatpush.msrb.mxu3 %v1856_v20 }
 0x262   : > { %v1603_v32 = vmax.f32 %v1601_v29, 0.0  ;;  %v1854_v29 = vld [vmem:[%s3693_s13 + $0x38] sm:$0xff] }
 0x263   : > { %1874 = vmatpush.msrb.mxu3 %v1855_v28 }
 0x264   : > { %v1609_v34 = vmax.f32 %v1603_v32, %v1607_v31  ;;  %v1852_v31 = vld [vmem:[%s3693_s13 + $0x28] sm:$0xff]  ;;  %v1851_v32 = vld [vmem:[%s3693_s13 + $0x20] sm:$0xff] }
 0x265   : > { %1875 = vmatpush.msrb.mxu3 %v1854_v29 }
 0x266   : > { %2262 = vmatpush.msk.msrb.mxu0 %vm1615_vm5, %v1609_v34  ;;  %2264 = vmatpush.msk.msrb.mxu1 %vm1615_vm5, %v1609_v34  ;;  %v1849_v34 = vld [vmem:[%s3693_s13 + $0x10] sm:$0xff] }
 0x267   : > { %1876 = vmatpush.msrb.mxu3 %v1853_v30 }
 0x268   : > { %1634 = vmatpush.msrb.mxu0 %v1608_v35  ;;  %1658 = vmatpush.msrb.mxu1 %v1608_v35  ;;  %v1848_v35 = vld [vmem:[%s3693_s13 + $0x8] sm:$0xff] }
 0x269   : > { %2263 = vmatmul.msk.f32.vlgmr.msrb.gmra.mxu0 %vm1611_vm6, %v1610_v36  ;;  %2265 = vmatmul.msk.f32.vlgmr.msrb.gmra.mxu1 %vm1611_vm6, %v1639_v37  ;;  %v1847_v36 = vld [vmem:[%s3693_s13] sm:$0xff]  ;;  %v1898_v37 = vld [vmem:[%s3695_s15 + $0x50] sm:$0xf] }
 0x26a   : > { %1722 = vmatpush.msra.mxu1 %v1676_v38  ;;  %1757 = vmatpush.msra.mxu0 %v2287_v46  ;;  %v1897_v38 = vld [vmem:[%s3695_s15 + $0x48] sm:$0xff] }
 0x26b   : > { %1877 = vmatpush.msrb.mxu3 %v1852_v31 }
 0x26c   : > { %1723 = vmatpush.msra.mxu1 %v1675_v39  ;;  %1758 = vmatpush.msra.mxu0 %v2286_v47  ;;  %v1896_v39 = vld [vmem:[%s3695_s15 + $0x40] sm:$0xff] }
 0x26d   : > { %1878 = vmatpush.msrb.mxu3 %v1851_v32 }
 0x26e   : > { %1724 = vmatpush.msra.mxu1 %v1674_v40  ;;  %1759 = vmatpush.msra.mxu0 %v2285_v48  ;;  %v1895_v40 = vld [vmem:[%s3695_s15 + $0x38] sm:$0xff] }
 0x26f   : > { %1879 = vmatpush.msrb.mxu3 %v1850_v33 }
 0x270   : > { %1725 = vmatpush.msra.mxu1 %v1673_v41  ;;  %1760 = vmatpush.msra.mxu0 %v2284_v50  ;;  %v1894_v41 = vld [vmem:[%s3695_s15 + $0x30] sm:$0xff] }
 0x271   : > { %1880 = vmatpush.msrb.mxu3 %v1849_v34 }
 0x272   : > { %1726 = vmatpush.msra.mxu1 %v1672_v42  ;;  %1761 = vmatpush.msra.mxu0 %v2283_v54  ;;  %v1893_v42 = vld [vmem:[%s3695_s15 + $0x28] sm:$0xff] }
 0x273   : > { %1881 = vmatpush.msrb.mxu3 %v1848_v35 }
 0x274   : > { %1727 = vmatpush.msra.mxu1 %v1671_v43  ;;  %1762 = vmatpush.msra.mxu0 %v2282_v61  ;;  %v1892_v43 = vld [vmem:[%s3695_s15 + $0x20] sm:$0xff] }
 0x275   : > { %1882 = vmatpush.msrb.mxu3 %v1847_v36 }
 0x276   : > { %1728 = vmatpush.msra.mxu1 %v1670_v44  ;;  %1763 = vmatpush.msra.mxu0 %v2281_v62  ;;  %v1891_v44 = vld [vmem:[%s3695_s15 + $0x18] sm:$0xff] }
 0x278   : > { %1729 = vmatpush.msra.mxu1 %v1669_v45  ;;  %1764 = vmatpush.msra.mxu0 %v2280_v0  ;;  %v1899_v0 = vld [vmem:[%s3723_s30] sm:$0x1] }
 0x27a   : > { %1730 = vmatpush.msra.mxu1 %v1668_v49  ;;  %1765 = vmatpush.msra.mxu0 %v2279_v3 }
 0x27c   : > { %1731 = vmatpush.msra.mxu1 %v1667_v51  ;;  %1766 = vmatpush.msra.mxu0 %v2278_v9 }
 0x27e   : > { %1793 = vmatpush.msrb.mxu1 %v2298_v53  ;;  %2312 = vmatpush.msk.msrb.mxu0 %vm1102_vm1, %v1898_v37  ;;  %v1844_v53 = vld [vmem:[%s3692_s12] sm:$0x1] }
 0x280   : > { %1794 = vmatpush.msrb.mxu1 %v2297_v57  ;;  %1912 = vmatpush.msrb.mxu0 %v1897_v38  ;;  %v1890_v57 = vld [vmem:[%s3695_s15 + $0x10] sm:$0xff] }
 0x282   : > { %1795 = vmatpush.msrb.mxu1 %v2296_v58  ;;  %1913 = vmatpush.msrb.mxu0 %v1896_v39  ;;  %v1889_v58 = vld [vmem:[%s3695_s15 + $0x8] sm:$0xff] }
 0x284   : > { %1796 = vmatpush.msrb.mxu1 %v2295_v60  ;;  %1914 = vmatpush.msrb.mxu0 %v1895_v40  ;;  %v1862_v60 = vld [vmem:[%s3694_s14] sm:$0x1] }
 0x286   : > { %1797 = vmatpush.msrb.mxu1 %v2294_v2  ;;  %1915 = vmatpush.msrb.mxu0 %v1894_v41 }
 0x288   : > { %1798 = vmatpush.msrb.mxu1 %v2293_v5  ;;  %1916 = vmatpush.msrb.mxu0 %v1893_v42 }
 0x28a   : > { %1799 = vmatpush.msrb.mxu1 %v2292_v6  ;;  %1917 = vmatpush.msrb.mxu0 %v1892_v43 }
 0x28c   : > { %1800 = vmatpush.msrb.mxu1 %v2291_v8  ;;  %1918 = vmatpush.msrb.mxu0 %v1891_v44 }
 0x28e   : > { %1801 = vmatpush.msrb.mxu1 %v2290_v12  ;;  %1919 = vmatpush.msrb.mxu0 %v1890_v57 }
 0x290   : > { %1802 = vmatpush.msrb.mxu1 %v2289_v13  ;;  %1920 = vmatpush.msrb.mxu0 %v1889_v58 }
 0x292   : > { %1921 = vmatpush.msrb.mxu0 %v1888_v59 }
 0x2e6   : > { %v1636_v19 = vpop.f32.mrf.mxu0  ;;  %v1660_v21 = vpop.f32.mrf.mxu1 }
 0x2e7   : > { %v1663_v22 = vmax.f32 %v1636_v19, %v1660_v21 }
 0x2e9   : > { %1665 = vst.msk [vmem:[#allocation3] sm:$0x1f] %vm1664_vm7, %v1663_v22 }
 0x2f0   : > { %v1677_v23 = vld [vmem:[#allocation3 + $0x1] sm:$0x1]  ;;  %v1666_v24 = vld [vmem:[#allocation3] sm:$0x1]  ;;  %v1736_v25 = vld [vmem:[#allocation3 + $0x2] sm:$0x1] }
 0x2f1   : > { %2276 = vmatmul.msk.f32.vlgmr.msra.gmra.mxu2 %vm1689_vm8, %v1677_v23  ;;  %2277 = vmatmul.msk.f32.vlgmr.msra.gmra.mxu1 %vm1689_vm8, %v1666_v24  ;;  %v1808_v26 = vld [vmem:[#allocation3 + $0x4] sm:$0x1]  ;;  %v1772_v27 = vld [vmem:[#allocation3 + $0x3] sm:$0x1] }
 0x2f2   : > { %2288 = vmatmul.msk.f32.vlgmr.msra.gmra.mxu0 %vm1689_vm8, %v1736_v25 }
 0x2f9   : > { %2310 = vmatmul.msk.f32.vlgmr.msrb.gmra.mxu2 %vm1689_vm8, %v1808_v26  ;;  %2299 = vmatmul.msk.f32.vlgmr.msrb.gmra.mxu1 %vm1689_vm8, %v1772_v27 }
 0x36e   : > { %v1733_v45 = vpop.f32.mrf.mxu1 }
 0x36f   : > { %v1768_v48 = vpop.f32.mrf.mxu0 }
 0x374   : > { %v1710_v46 = vpop.f32.mrf.mxu2 }
 0x375   : > { %v1734_v47 = vadd.f32 %v1733_v45, %v1710_v46 }
 0x376   : > { %v1804_v50 = vpop.f32.mrf.mxu1 }
 0x377   : > { %v1771_v49 = vadd.f32 %v1768_v48, %v1734_v47 }
 0x379   : > { %v1807_v51 = vadd.f32 %v1804_v50, %v1771_v49 }
 0x37c   : > { %v1840_v52 = vpop.f32.mrf.mxu2 }
 0x37d   : > { %v1843_v54 = vadd.f32 %v1840_v52, %v1807_v51 }
 0x37f   : > { %v1845_v55 = vadd.f32 %v1844_v53, %v1843_v54 }
 0x381   : > { %v1846_v56 = vmax.f32 %v1845_v55, 0.0 }
 0x383   : > { %2311 = vmatmul.msk.f32.vlgmr.msrb.gmra.mxu3 %vm1863_vm9, %v1846_v56 }
 0x406   : > { %v1884_v61 = vpop.f32.mrf.mxu3 }
 0x407   : > { %v1885_v62 = vadd.f32 %v1884_v61, %v1862_v60 }
 0x409   : > { %v1887_v63 = vmax.f32 %v1885_v62, 0.0 }
 0x40b   : > { %2313 = vmatmul.msk.f32.vlgmr.msrb.gmra.mxu0 %vm1162_vm3, %v1887_v63 }
 0x488   : > { %v1923_v1 = vpop.f32.mrf.mxu0 }
 0x489   : > { %v1924_v2 = vadd.f32 %v1923_v1, %v1899_v0 }
 0x48b   : > { %1927 = vst.msk [vmem:[%s540_s26] sm:$0x1] %vm1926_vm10, %v1924_v2 }
 0x48c   : > { %2397 = shalt.err (!%p2394_p3)
}
 0x48d   : > { %2329 = dma.vmem_to_hbm [thread:$0]  (%p2562_p5), %s1940_s1, 16, %s1942_s0, %s1929_s16  }
 0x48e PF: > { %s3725_s27 = sld [smem:[#allocation9_spill]] }
 0x48f   : > { %s3726_s19 = sld [smem:[#allocation7_spill]] }
 0x494   : > { %p2335_p4 = scmp.ge.s32.totalorder %s3725_s27, 2 }
 0x495   : > { %s1953_s26 = sand.u32 1, %s3726_s19  }
 0x496   : > { %p2332_p7 = pnand %p2335_p4, %p2566_p6  ;;  %s1954_s28 = scalar_lea.sflag [#allocation5], %s1953_s26 }
 0x498   : > { %p2333_p8 = pneg %p2332_p7 }
 0x49a   : > { %2415 = dma.done.wait (%p2333_p8), %s1954_s28, 16  }
 0x49b   : > { %2417 = vsyncadd (%p2333_p8), %s1954_s28, 4294967280  ;;  %s3728_s27 = sld [smem:[#allocation10_spill]]  ;;  %s3731_s24 = smov %s2424_s25 }
 0x49c   : > { %s3729_s2 = sld [smem:[#allocation8_spill]] }
 0x49d   : > { %s3730_s26 = sld [smem:[#allocation11_spill]] }
 0x4a1   : > { %p27_p9 = scmp.ge.s32.totalorder %s3728_s27, 4  }
 0x4a2   : > { %s3732_s25 = smov %s3729_s2 }
 0x4a3   :  { %29 = sbr.rel (!%p27_p9) target bundleno = 8 (0x8), region = 143 }
 0x4a8   :  { %1959 = vsyncpa [#allocation5], 1 }
 0x4a9   :  { %1961 = vsyncpa [#allocation5 + $0x1], 1 }

</bundles_post_ra>
